<compile_context>
chip_gen: v7x
topology: tpu7x:2x2x1
jax: 0.10.0
libtpu: 0.0.40
codegen_flags: <defaults>
</compile_context>

<pallas_src>
import functools
import math

import jax
import jax.numpy as jnp
from jax.experimental import pallas as pl
from jax.experimental.pallas import tpu as pltpu

# ----------------------------- model hyper-params ---------------------------
STATE_DIM = 6
ACTION_DIM = 2
MODEL_DIM = 32
NUM_HEADS = 4
DIM_FF = 64
N_LAYERS = 2
MAX_AGENTS = 8          # delta_array_size = (2, 4)
ACT_LIMIT = 1.0
EPS = 1e-6              # LayerNorm eps (elementwise_affine=False)


# ----------------------------- packed param layout ---------------------------
def _make_layout(entries):
    """Each chunk starts at a 128-lane-aligned column (avoids lane relayouts)."""
    layout, off = {}, 0
    for name, width in entries:
        layout[name] = (off, width)
        off += -(-width // 128) * 128
    return layout, off


_W32_ENTRIES = [("ada", (6 * N_LAYERS + 2) * MODEL_DIM)]
for _l in range(N_LAYERS):
    _W32_ENTRIES += [(f"qkv{_l}", 3 * MODEL_DIM), (f"wo{_l}", MODEL_DIM), (f"w1{_l}", DIM_FF)]
_W32_ENTRIES += [("wf", ACTION_DIM)]
_W32_LAYOUT, _W32_TOTAL = _make_layout(_W32_ENTRIES)

_W64_ENTRIES = [(f"w2{_l}", MODEL_DIM) for _l in range(N_LAYERS)]
_W64_LAYOUT, _W64_TOTAL = _make_layout(_W64_ENTRIES)

_B_ENTRIES = [("x0", MODEL_DIM), ("ada", (6 * N_LAYERS + 2) * MODEL_DIM)]
for _l in range(N_LAYERS):
    _B_ENTRIES += [(f"bqkv{_l}", 3 * MODEL_DIM), (f"bo{_l}", MODEL_DIM),
                   (f"b1{_l}", DIM_FF), (f"b2{_l}", MODEL_DIM)]
_B_ENTRIES += [("bf", ACTION_DIM)]
_B_LAYOUT, _B_TOTAL = _make_layout(_B_ENTRIES)


def _wslice(ref, layout, name):
    off, w = layout[name]
    return ref[:, off:off + w]


# ----------------------------- in-kernel helpers ----------------------------
def _gelu(x):
    # TODO(synk): tanh-approx GELU (1 EUP tanh + few VALU ops) instead of
    # PyTorch's exact-erf GELU; max abs error ~3e-4, well within RL-policy tolerance.
    return 0.5 * x * (1.0 + jnp.tanh(0.7978845608028654 * (x + 0.044715 * x * x * x)))


def _layer_norm(x):
    # LayerNorm(elementwise_affine=False), biased variance, eps=1e-6
    mu = jnp.mean(x, axis=-1, keepdims=True)
    xc = x - mu
    var = jnp.mean(xc * xc, axis=-1, keepdims=True)
    return xc * jax.lax.rsqrt(var + EPS)


# ----------------------------- fused forward kernel -------------------------
def _fused_forward_kernel(state_ref, pos_ref, w_emb_ref, w32_ref, w64_ref, b_ref, out_ref,
                          *, blk_bs, n_agents, num_heads, n_layers, act_limit):
    D = MODEL_DIM
    BN = blk_bs * n_agents
    dh = D // num_heads
    inv_sqrt_dh = 1.0 / math.sqrt(dh)

    state = state_ref[...]                                    # (BN, S)
    pos = pos_ref[...]                                        # (BN, 1) int32

    # ---- conditional encoding: SCE table lookup (one-hot matmul) + state enc ----
    agent_ids = jax.lax.broadcasted_iota(jnp.int32, (BN, MAX_AGENTS), 1)
    onehot = (pos == agent_ids).astype(jnp.float32)           # (BN, 8)
    sce_tbl = w_emb_ref[0:MAX_AGENTS, :]                      # (8, D): relu-SCE table (+ state_enc bias folded)
    ws = w_emb_ref[MAX_AGENTS:MAX_AGENTS + STATE_DIM, :]      # (6, D)
    cond = (jnp.dot(onehot, sce_tbl, preferred_element_type=jnp.float32)
            + jnp.dot(state, ws, preferred_element_type=jnp.float32))
    silu_cond = cond * jax.nn.sigmoid(cond)

    # ---- ALL adaLN modulations (both layers + final) in one lane-dense matmul ----
    all_mod = (jnp.dot(silu_cond, _wslice(w32_ref, _W32_LAYOUT, "ada"),
                       preferred_element_type=jnp.float32)
               + _wslice(b_ref, _B_LAYOUT, "ada"))            # (BN, (6*L+2)*D)

    # ---- x0 = GELU(action_embedding(zeros)) = GELU(b_a), precomputed at pack time ----
    x = jnp.broadcast_to(_wslice(b_ref, _B_LAYOUT, "x0"), (BN, D))

    # causal (lower-triangular) mask, shared by every batch element / head
    causal = (jax.lax.broadcasted_iota(jnp.int32, (n_agents, n_agents), 0)
              >= jax.lax.broadcasted_iota(jnp.int32, (n_agents, n_agents), 1))

    # ---------------- AdaLN decoder layers ----------------------------------
    for l in range(n_layers):
        base = l * 6 * D
        shift_msa = all_mod[:, base + 0 * D: base + 1 * D]
        scale_msa = all_mod[:, base + 1 * D: base + 2 * D]
        gate_msa  = all_mod[:, base + 2 * D: base + 3 * D]
        shift_mlp = all_mod[:, base + 3 * D: base + 4 * D]
        scale_mlp = all_mod[:, base + 4 * D: base + 5 * D]
        gate_mlp  = all_mod[:, base + 5 * D: base + 6 * D]

        moduln = _layer_norm(x) * (1.0 + scale_msa) + shift_msa

        # fused Q|K|V projection: one (BN,32)x(32,96) matmul
        qkv = (jnp.dot(moduln, _wslice(w32_ref, _W32_LAYOUT, f"qkv{l}"),
                       preferred_element_type=jnp.float32)
               + _wslice(b_ref, _B_LAYOUT, f"bqkv{l}"))
        q3 = qkv[:, 0 * D:1 * D].reshape(blk_bs, n_agents, D)
        k3 = qkv[:, 1 * D:2 * D].reshape(blk_bs, n_agents, D)
        v3 = qkv[:, 2 * D:3 * D].reshape(blk_bs, n_agents, D)

        # fold heads into the (leading) batch axis so a single rank-3 batched
        # matmul / softmax covers all heads (rank-3 dot_general = safe lowering)
        qh = jnp.concatenate([q3[:, :, h * dh:(h + 1) * dh] for h in range(num_heads)], axis=0)
        kh = jnp.concatenate([k3[:, :, h * dh:(h + 1) * dh] for h in range(num_heads)], axis=0)
        vh = jnp.concatenate([v3[:, :, h * dh:(h + 1) * dh] for h in range(num_heads)], axis=0)

        s = jnp.einsum('bnd,bmd->bnm', qh, kh,
                       preferred_element_type=jnp.float32) * inv_sqrt_dh
        s = jnp.where(causal[None, :, :], s, -1e30)           # masked_fill(tril==0, -inf)
        s = s - jnp.max(s, axis=-1, keepdims=True)
        p = jnp.exp(s)
        p = p / jnp.sum(p, axis=-1, keepdims=True)             # exact softmax (parity)
        oh = jnp.einsum('bnm,bmd->bnd', p, vh, preferred_element_type=jnp.float32)

        # combine_heads: lanes ordered head0|head1|... then one W_O matmul
        attn = jnp.concatenate(
            [oh[h * blk_bs:(h + 1) * blk_bs] for h in range(num_heads)], axis=-1
        ).reshape(BN, D)
        attn = (jnp.dot(attn, _wslice(w32_ref, _W32_LAYOUT, f"wo{l}"),
                        preferred_element_type=jnp.float32)
                + _wslice(b_ref, _B_LAYOUT, f"bo{l}"))
        x = x + gate_msa * attn

        mod2 = _layer_norm(x) * (1.0 + scale_mlp) + shift_mlp
        hid = _gelu(jnp.dot(mod2, _wslice(w32_ref, _W32_LAYOUT, f"w1{l}"),
                            preferred_element_type=jnp.float32)
                    + _wslice(b_ref, _B_LAYOUT, f"b1{l}"))
        mlp_out = (jnp.dot(hid, _wslice(w64_ref, _W64_LAYOUT, f"w2{l}"),
                           preferred_element_type=jnp.float32)
                   + _wslice(b_ref, _B_LAYOUT, f"b2{l}"))
        x = x + gate_mlp * mlp_out

    # ---------------- FinalLayer + act_limit * tanh --------------------------
    fbase = n_layers * 6 * D
    shift_f = all_mod[:, fbase:fbase + D]
    scale_f = all_mod[:, fbase + D:fbase + 2 * D]
    y = _layer_norm(x) * (1.0 + scale_f) + shift_f
    y = (jnp.dot(y, _wslice(w32_ref, _W32_LAYOUT, "wf"), preferred_element_type=jnp.float32)
         + _wslice(b_ref, _B_LAYOUT, "bf"))
    # output kept lane-width ACTION_DIM=2: at small BN a lane-dense padded store +
    # wrapper slice costs more than the single masked vst it saves.
    out_ref[...] = act_limit * jnp.tanh(y)


# ----------------------------- param packing ---------------------------------
def _put(buf, layout, name, arr):
    off, w = layout[name]
    return buf.at[:, off:off + w].set(arr)


def pack_params(p):
    """Fold constants and concat everything into 4 flat, lane-aligned buffers."""
    # SCE path commutes with the one-hot selection -> bake a table, fold state_enc bias.
    h = jnp.maximum(p['sce_emb'] @ p['we1'] + p['be1'], 0.0)
    sce_tbl = jnp.maximum(h @ p['we2'] + p['be2'], 0.0) + p['bs']        # (8, D)
    w_emb = jnp.concatenate([sce_tbl, p['ws']], axis=0).astype(jnp.float32)  # (14, D)

    # zero-action embedding -> GELU(b_a) constant (exact erf GELU, computed in XLA).
    x0 = jax.nn.gelu(p['ba'], approximate=False)                         # (1, D)

    w_ada_all = jnp.concatenate([lp['w_ada'] for lp in p['layers']] + [p['wf_ada']], axis=1)
    b_ada_all = jnp.concatenate([lp['b_ada'] for lp in p['layers']] + [p['bf_ada']], axis=1)

    w32 = jnp.zeros((MODEL_DIM, _W32_TOTAL), jnp.float32)
    w32 = _put(w32, _W32_LAYOUT, "ada", w_ada_all)
    w64 = jnp.zeros((DIM_FF, _W64_TOTAL), jnp.float32)
    bias = jnp.zeros((1, _B_TOTAL), jnp.float32)
    bias = _put(bias, _B_LAYOUT, "x0", x0)
    bias = _put(bias, _B_LAYOUT, "ada", b_ada_all)
    for l, lp in enumerate(p['layers']):
        w32 = _put(w32, _W32_LAYOUT, f"qkv{l}", jnp.concatenate([lp['wq'], lp['wk'], lp['wv']], axis=1))
        w32 = _put(w32, _W32_LAYOUT, f"wo{l}", lp['wo'])
        w32 = _put(w32, _W32_LAYOUT, f"w1{l}", lp['w1'])
        w64 = _put(w64, _W64_LAYOUT, f"w2{l}", lp['w2'])
        bias = _put(bias, _B_LAYOUT, f"bqkv{l}", jnp.concatenate([lp['bq'], lp['bk'], lp['bv']], axis=1))
        bias = _put(bias, _B_LAYOUT, f"bo{l}", lp['bo'])
        bias = _put(bias, _B_LAYOUT, f"b1{l}", lp['b1'])
        bias = _put(bias, _B_LAYOUT, f"b2{l}", lp['b2'])
    w32 = _put(w32, _W32_LAYOUT, "wf", p['wf'])
    bias = _put(bias, _B_LAYOUT, "bf", p['bf'])
    return {'w_emb': w_emb, 'w32': w32, 'w64': w64, 'bias': bias}


# ----------------------------- wrapper ---------------------------------------
def _choose_block_bs(bs, n_agents):
    # whole agent groups per block; rows capped at ~1024 so the layout is v7x-safe
    # (64 MiB VMEM).  On v5e/v6e (128 MiB) this cap can be raised / swept.
    rows_cap = 1024
    blk = max(1, min(bs, rows_cap // max(1, n_agents)))
    while bs % blk != 0:
        blk -= 1
    if (blk * n_agents) % 8 != 0 and blk != bs:
        blk = bs    # fall back to a single block to satisfy (8,128) sublane tiling
    return blk


@jax.jit
def transformer_forward(packed, state, pos):
    """Transformer.forward(state, pos) = act_limit * tanh(GPT_AdaLN(state, 0, pos))."""
    bs, n_agents, _ = state.shape
    bn = bs * n_agents
    state_f = state.reshape(bn, STATE_DIM).astype(jnp.float32)
    pos_f = pos.reshape(bn, 1).astype(jnp.int32)

    blk_bs = _choose_block_bs(bs, n_agents)
    blk_rows = blk_bs * n_agents
    grid = (bs // blk_bs,)

    kernel = functools.partial(
        _fused_forward_kernel, blk_bs=blk_bs, n_agents=n_agents,
        num_heads=NUM_HEADS, n_layers=N_LAYERS, act_limit=ACT_LIMIT)

    def row_spec(ncols):
        return pl.BlockSpec((blk_rows, ncols), lambda i: (i, 0))

    def full_spec(arr):   # weights: constant block index -> stay VMEM resident
        return pl.BlockSpec(arr.shape, lambda i: (0, 0))

    out = pl.pallas_call(
        kernel,
        grid=grid,
        out_shape=jax.ShapeDtypeStruct((bn, ACTION_DIM), jnp.float32),
        in_specs=[row_spec(STATE_DIM), row_spec(1),
                  full_spec(packed['w_emb']), full_spec(packed['w32']),
                  full_spec(packed['w64']), full_spec(packed['bias'])],
        out_specs=row_spec(ACTION_DIM),
        compiler_params=pltpu.CompilerParams(
            dimension_semantics=("parallel",),
            vmem_limit_bytes=32 * 1024 * 1024),
    )(state_f, pos_f, packed['w_emb'], packed['w32'], packed['w64'], packed['bias'])
    return out.reshape(bs, n_agents, ACTION_DIM)


# ----------------------------- deterministic params --------------------------
def _linear(key, fan_in, fan_out, zero_bias=True):
    kw, kb = jax.random.split(key)
    w = jax.random.normal(kw, (fan_in, fan_out), jnp.float32) / math.sqrt(fan_in)
    if zero_bias:
        b = jnp.zeros((1, fan_out), jnp.float32)
    else:
        bound = 1.0 / math.sqrt(fan_in)
        b = jax.random.uniform(kb, (1, fan_out), jnp.float32, -bound, bound)
    return w, b


def init_params(key):
    # TODO(synk): orthogonal init (wt_init_) approximated with scaled normal init;
    # parameter values are synthetic anyway.
    keys = iter(jax.random.split(key, 64))
    p = {}
    p['sce_emb'] = jax.random.normal(next(keys), (MAX_AGENTS, MODEL_DIM), jnp.float32)
    p['we1'], p['be1'] = _linear(next(keys), MODEL_DIM, MODEL_DIM, zero_bias=False)
    p['we2'], p['be2'] = _linear(next(keys), MODEL_DIM, MODEL_DIM, zero_bias=False)
    p['ws'], p['bs'] = _linear(next(keys), STATE_DIM, MODEL_DIM, zero_bias=False)
    p['wa'], p['ba'] = _linear(next(keys), ACTION_DIM, MODEL_DIM, zero_bias=False)  # wa unused (zero actions)
    layers = []
    for _ in range(N_LAYERS):
        lp = {}
        lp['w_ada'], lp['b_ada'] = _linear(next(keys), MODEL_DIM, 6 * MODEL_DIM, zero_bias=False)
        lp['wq'], lp['bq'] = _linear(next(keys), MODEL_DIM, MODEL_DIM)
        lp['wk'], lp['bk'] = _linear(next(keys), MODEL_DIM, MODEL_DIM)
        lp['wv'], lp['bv'] = _linear(next(keys), MODEL_DIM, MODEL_DIM)
        lp['wo'], lp['bo'] = _linear(next(keys), MODEL_DIM, MODEL_DIM)
        lp['w1'], lp['b1'] = _linear(next(keys), MODEL_DIM, DIM_FF)
        lp['w2'], lp['b2'] = _linear(next(keys), DIM_FF, MODEL_DIM)
        layers.append(lp)
    p['layers'] = layers
    p['wf_ada'], p['bf_ada'] = _linear(next(keys), MODEL_DIM, 2 * MODEL_DIM)
    p['wf'], p['bf'] = _linear(next(keys), MODEL_DIM, ACTION_DIM)
    return p


# ----------------------------- pure-JAX reference -----------------------------
def reference_forward(p, state, pos):
    bs, n, _ = state.shape
    dh = MODEL_DIM // NUM_HEADS

    def ln(t):
        mu = t.mean(-1, keepdims=True)
        var = ((t - mu) ** 2).mean(-1, keepdims=True)
        return (t - mu) * jax.lax.rsqrt(var + EPS)

    emb = p['sce_emb'][pos[..., 0]]
    sce = jax.nn.relu(jax.nn.relu(emb @ p['we1'] + p['be1']) @ p['we2'] + p['be2'])
    cond = sce + state @ p['ws'] + p['bs']
    silu_c = cond * jax.nn.sigmoid(cond)
    x = jnp.broadcast_to(jax.nn.gelu(p['ba'], approximate=False), (bs, n, MODEL_DIM))
    tril = jnp.tril(jnp.ones((n, n), bool))
    for lp in p['layers']:
        mod = silu_c @ lp['w_ada'] + lp['b_ada']
        sh_msa, sc_msa, g_msa, sh_mlp, sc_mlp, g_mlp = jnp.split(mod, 6, axis=-1)
        m = ln(x) * (1 + sc_msa) + sh_msa
        q = (m @ lp['wq'] + lp['bq']).reshape(bs, n, NUM_HEADS, dh).transpose(0, 2, 1, 3)
        k = (m @ lp['wk'] + lp['bk']).reshape(bs, n, NUM_HEADS, dh).transpose(0, 2, 1, 3)
        v = (m @ lp['wv'] + lp['bv']).reshape(bs, n, NUM_HEADS, dh).transpose(0, 2, 1, 3)
        s = jnp.einsum('bhnd,bhmd->bhnm', q, k) / math.sqrt(dh)
        s = jnp.where(tril[None, None], s, -jnp.inf)
        pr = jax.nn.softmax(s, axis=-1)
        o = jnp.einsum('bhnm,bhmd->bnhd', pr, v).reshape(bs, n, MODEL_DIM)
        x = x + g_msa * (o @ lp['wo'] + lp['bo'])
        m2 = ln(x) * (1 + sc_mlp) + sh_mlp
        hid = jax.nn.gelu(m2 @ lp['w1'] + lp['b1'], approximate=False)
        x = x + g_mlp * (hid @ lp['w2'] + lp['b2'])
    fmod = silu_c @ p['wf_ada'] + p['bf_ada']
    sh_f, sc_f = jnp.split(fmod, 2, axis=-1)
    y = ln(x) * (1 + sc_f) + sh_f
    return ACT_LIMIT * jnp.tanh(y @ p['wf'] + p['bf'])


# ----------------------------- main ------------------------------------------
if __name__ == "__main__":
    root = jax.random.PRNGKey(0)
    k_param, k_state = jax.random.split(root)

    params = init_params(k_param)
    packed = pack_params(params)

    bs, n_agents = 2, MAX_AGENTS
    state = jax.random.normal(k_state, (bs, n_agents, STATE_DIM), jnp.float32)
    pos = jnp.tile(jnp.arange(n_agents, dtype=jnp.int32)[None, :, None], (bs, 1, 1))

    out = transformer_forward(packed, state, pos)
    jax.block_until_ready(out)
    assert out.shape == (bs, n_agents, ACTION_DIM)
    assert bool(jnp.all(jnp.isfinite(out)))

    ref = reference_forward(params, state, pos)
    max_err = float(jnp.max(jnp.abs(out - ref)))
    assert max_err < 2e-2, f"mismatch vs reference: {max_err}"
    print("KERNEL_OK")
</pallas_src>

<mosaic_0001>
module attributes {stable_mosaic.version = 11 : i64} {
  func.func @_fused_forward_kernel(%arg0: i32, %arg1: memref<16x6xf32, #tpu.memory_space<vmem>>, %arg2: memref<16x1xi32, #tpu.memory_space<vmem>>, %arg3: memref<14x32xf32, #tpu.memory_space<vmem>>, %arg4: memref<32x1408xf32, #tpu.memory_space<vmem>>, %arg5: memref<64x256xf32, #tpu.memory_space<vmem>>, %arg6: memref<1x1792xf32, #tpu.memory_space<vmem>>, %arg7: memref<16x2xf32, #tpu.memory_space<vmem>>) attributes {dimension_semantics = [#tpu.dimension_semantics<parallel>], iteration_bounds = array<i64: 1>, scalar_prefetch = 0 : i64, scratch_operands = 0 : i64, tpu.core_type = #tpu.core_type<tc>, window_params = [{transform_indices = @transform_0, window_bounds = array<i64: 16, 6>}, {transform_indices = @transform_1, window_bounds = array<i64: 16, 1>}, {pipeline_mode = #tpu.pipeline_mode<synchronous>, transform_indices = @transform_2, window_bounds = array<i64: 14, 32>}, {pipeline_mode = #tpu.pipeline_mode<synchronous>, transform_indices = @transform_3, window_bounds = array<i64: 32, 1408>}, {pipeline_mode = #tpu.pipeline_mode<synchronous>, transform_indices = @transform_4, window_bounds = array<i64: 64, 256>}, {pipeline_mode = #tpu.pipeline_mode<synchronous>, transform_indices = @transform_5, window_bounds = array<i64: 1, 1792>}, {transform_indices = @transform_6, window_bounds = array<i64: 16, 2>}]} {
    %c0 = arith.constant 0 : index
    %c0_0 = arith.constant 0 : index
    %0 = vector.load %arg1[%c0, %c0_0] : memref<16x6xf32, #tpu.memory_space<vmem>>, vector<16x6xf32>
    %c0_1 = arith.constant 0 : index
    %c0_2 = arith.constant 0 : index
    %1 = vector.load %arg2[%c0_1, %c0_2] : memref<16x1xi32, #tpu.memory_space<vmem>>, vector<16x1xi32>
    %2 = tpu.iota {dimensions = array<i32: 1>} : vector<16x8xi32>
    %3 = vector.broadcast %1 : vector<16x1xi32> to vector<16x8xi32>
    %4 = arith.cmpi eq, %3, %2 : vector<16x8xi32>
    %5 = arith.extui %4 : vector<16x8xi1> to vector<16x8xi32>
    %6 = arith.sitofp %5 : vector<16x8xi32> to vector<16x8xf32>
    %c0_3 = arith.constant 0 : index
    %c0_4 = arith.constant 0 : index
    %7 = vector.load %arg3[%c0_3, %c0_4] : memref<14x32xf32, #tpu.memory_space<vmem>>, vector<8x32xf32>
    %c8 = arith.constant 8 : index
    %c0_5 = arith.constant 0 : index
    %8 = vector.load %arg3[%c8, %c0_5] : memref<14x32xf32, #tpu.memory_space<vmem>>, vector<6x32xf32>
    %cst = arith.constant dense<0.000000e+00> : vector<16x32xf32>
    %9 = tpu.matmul %6, %7, %cst {dimension_numbers = #tpu.dot_dimension_numbers<[1], [0], [0], [1], [0, 0, 1, 1], [], []>} : vector<16x8xf32>, vector<8x32xf32>, vector<16x32xf32> -> vector<16x32xf32>
    %cst_6 = arith.constant dense<0.000000e+00> : vector<16x32xf32>
    %10 = tpu.matmul %0, %8, %cst_6 {dimension_numbers = #tpu.dot_dimension_numbers<[1], [0], [0], [1], [0, 0, 1, 1], [], []>} : vector<16x6xf32>, vector<6x32xf32>, vector<16x32xf32> -> vector<16x32xf32>
    %11 = arith.addf %9, %10 : vector<16x32xf32>
    %12 = arith.negf %11 : vector<16x32xf32>
    %13 = math.exp %12 : vector<16x32xf32>
    %cst_7 = arith.constant 1.000000e+00 : f32
    %14 = vector.broadcast %cst_7 : f32 to vector<16x32xf32>
    %15 = arith.addf %14, %13 : vector<16x32xf32>
    %16 = arith.divf %14, %15 : vector<16x32xf32>
    %17 = arith.mulf %11, %16 : vector<16x32xf32>
    %c0_8 = arith.constant 0 : index
    %c0_9 = arith.constant 0 : index
    %18 = vector.load %arg4[%c0_8, %c0_9] : memref<32x1408xf32, #tpu.memory_space<vmem>>, vector<32x448xf32>
    %cst_10 = arith.constant dense<0.000000e+00> : vector<16x448xf32>
    %19 = tpu.matmul %17, %18, %cst_10 {dimension_numbers = #tpu.dot_dimension_numbers<[1], [0], [0], [1], [0, 0, 1, 1], [], []>} : vector<16x32xf32>, vector<32x448xf32>, vector<16x448xf32> -> vector<16x448xf32>
    %c0_11 = arith.constant 0 : index
    %c128 = arith.constant 128 : index
    %20 = vector.load %arg6[%c0_11, %c128] : memref<1x1792xf32, #tpu.memory_space<vmem>>, vector<1x448xf32>
    %21 = vector.broadcast %20 : vector<1x448xf32> to vector<16x448xf32>
    %22 = arith.addf %19, %21 : vector<16x448xf32>
    %c0_12 = arith.constant 0 : index
    %c0_13 = arith.constant 0 : index
    %23 = vector.load %arg6[%c0_12, %c0_13] : memref<1x1792xf32, #tpu.memory_space<vmem>>, vector<1x32xf32>
    %24 = vector.shape_cast %23 : vector<1x32xf32> to vector<1x32xf32>
    %25 = vector.broadcast %24 : vector<1x32xf32> to vector<16x32xf32>
    %26 = tpu.iota {dimensions = array<i32: 0>} : vector<8x8xi32>
    %27 = tpu.iota {dimensions = array<i32: 1>} : vector<8x8xi32>
    %28 = arith.cmpi sge, %26, %27 : vector<8x8xi32>
    %29 = vector.extract_strided_slice %22 {offsets = [0, 0], sizes = [16, 32], strides = [1, 1]} : vector<16x448xf32> to vector<16x32xf32>
    %30 = vector.extract_strided_slice %22 {offsets = [0, 32], sizes = [16, 32], strides = [1, 1]} : vector<16x448xf32> to vector<16x32xf32>
    %31 = vector.extract_strided_slice %22 {offsets = [0, 64], sizes = [16, 32], strides = [1, 1]} : vector<16x448xf32> to vector<16x32xf32>
    %32 = vector.extract_strided_slice %22 {offsets = [0, 96], sizes = [16, 32], strides = [1, 1]} : vector<16x448xf32> to vector<16x32xf32>
    %33 = vector.extract_strided_slice %22 {offsets = [0, 128], sizes = [16, 32], strides = [1, 1]} : vector<16x448xf32> to vector<16x32xf32>
    %34 = vector.extract_strided_slice %22 {offsets = [0, 160], sizes = [16, 32], strides = [1, 1]} : vector<16x448xf32> to vector<16x32xf32>
    %cst_14 = arith.constant dense<0.000000e+00> : vector<16xf32>
    %35 = vector.multi_reduction <add>, %25, %cst_14 [1] : vector<16x32xf32> to vector<16xf32>
    %36 = vector.shape_cast %35 : vector<16xf32> to vector<16x1xf32>
    %cst_15 = arith.constant 3.200000e+01 : f32
    %37 = vector.broadcast %cst_15 : f32 to vector<16x1xf32>
    %38 = arith.divf %36, %37 : vector<16x1xf32>
    %39 = vector.broadcast %38 : vector<16x1xf32> to vector<16x32xf32>
    %40 = arith.subf %25, %39 : vector<16x32xf32>
    %41 = arith.mulf %40, %40 : vector<16x32xf32>
    %cst_16 = arith.constant dense<0.000000e+00> : vector<16xf32>
    %42 = vector.multi_reduction <add>, %41, %cst_16 [1] : vector<16x32xf32> to vector<16xf32>
    %43 = vector.shape_cast %42 : vector<16xf32> to vector<16x1xf32>
    %cst_17 = arith.constant 3.200000e+01 : f32
    %44 = vector.broadcast %cst_17 : f32 to vector<16x1xf32>
    %45 = arith.divf %43, %44 : vector<16x1xf32>
    %cst_18 = arith.constant 9.99999997E-7 : f32
    %46 = vector.broadcast %cst_18 : f32 to vector<16x1xf32>
    %47 = arith.addf %45, %46 : vector<16x1xf32>
    %48 = math.rsqrt %47 : vector<16x1xf32>
    %49 = vector.broadcast %48 : vector<16x1xf32> to vector<16x32xf32>
    %50 = arith.mulf %40, %49 : vector<16x32xf32>
    %cst_19 = arith.constant 1.000000e+00 : f32
    %51 = vector.broadcast %cst_19 : f32 to vector<16x32xf32>
    %52 = arith.addf %51, %30 : vector<16x32xf32>
    %53 = arith.mulf %50, %52 : vector<16x32xf32>
    %54 = arith.addf %53, %29 : vector<16x32xf32>
    %c0_20 = arith.constant 0 : index
    %c512 = arith.constant 512 : index
    %55 = vector.load %arg4[%c0_20, %c512] : memref<32x1408xf32, #tpu.memory_space<vmem>>, vector<32x96xf32>
    %cst_21 = arith.constant dense<0.000000e+00> : vector<16x96xf32>
    %56 = tpu.matmul %54, %55, %cst_21 {dimension_numbers = #tpu.dot_dimension_numbers<[1], [0], [0], [1], [0, 0, 1, 1], [], []>} : vector<16x32xf32>, vector<32x96xf32>, vector<16x96xf32> -> vector<16x96xf32>
    %c0_22 = arith.constant 0 : index
    %c640 = arith.constant 640 : index
    %57 = vector.load %arg6[%c0_22, %c640] : memref<1x1792xf32, #tpu.memory_space<vmem>>, vector<1x96xf32>
    %58 = vector.broadcast %57 : vector<1x96xf32> to vector<16x96xf32>
    %59 = arith.addf %56, %58 : vector<16x96xf32>
    %60 = vector.extract_strided_slice %59 {offsets = [0, 0], sizes = [16, 32], strides = [1, 1]} : vector<16x96xf32> to vector<16x32xf32>
    %61 = vector.shape_cast %60 : vector<16x32xf32> to vector<2x8x32xf32>
    %62 = vector.extract_strided_slice %59 {offsets = [0, 32], sizes = [16, 32], strides = [1, 1]} : vector<16x96xf32> to vector<16x32xf32>
    %63 = vector.shape_cast %62 : vector<16x32xf32> to vector<2x8x32xf32>
    %64 = vector.extract_strided_slice %59 {offsets = [0, 64], sizes = [16, 32], strides = [1, 1]} : vector<16x96xf32> to vector<16x32xf32>
    %65 = vector.shape_cast %64 : vector<16x32xf32> to vector<2x8x32xf32>
    %66 = vector.extract_strided_slice %61 {offsets = [0, 0, 0], sizes = [2, 8, 8], strides = [1, 1, 1]} : vector<2x8x32xf32> to vector<2x8x8xf32>
    %67 = vector.extract_strided_slice %61 {offsets = [0, 0, 8], sizes = [2, 8, 8], strides = [1, 1, 1]} : vector<2x8x32xf32> to vector<2x8x8xf32>
    %68 = vector.extract_strided_slice %61 {offsets = [0, 0, 16], sizes = [2, 8, 8], strides = [1, 1, 1]} : vector<2x8x32xf32> to vector<2x8x8xf32>
    %69 = vector.extract_strided_slice %61 {offsets = [0, 0, 24], sizes = [2, 8, 8], strides = [1, 1, 1]} : vector<2x8x32xf32> to vector<2x8x8xf32>
    %70 = tpu.concatenate %66, %67, %68, %69 in 0 : vector<2x8x8xf32>, vector<2x8x8xf32>, vector<2x8x8xf32>, vector<2x8x8xf32> -> vector<8x8x8xf32>
    %71 = vector.extract_strided_slice %63 {offsets = [0, 0, 0], sizes = [2, 8, 8], strides = [1, 1, 1]} : vector<2x8x32xf32> to vector<2x8x8xf32>
    %72 = vector.extract_strided_slice %63 {offsets = [0, 0, 8], sizes = [2, 8, 8], strides = [1, 1, 1]} : vector<2x8x32xf32> to vector<2x8x8xf32>
    %73 = vector.extract_strided_slice %63 {offsets = [0, 0, 16], sizes = [2, 8, 8], strides = [1, 1, 1]} : vector<2x8x32xf32> to vector<2x8x8xf32>
    %74 = vector.extract_strided_slice %63 {offsets = [0, 0, 24], sizes = [2, 8, 8], strides = [1, 1, 1]} : vector<2x8x32xf32> to vector<2x8x8xf32>
    %75 = tpu.concatenate %71, %72, %73, %74 in 0 : vector<2x8x8xf32>, vector<2x8x8xf32>, vector<2x8x8xf32>, vector<2x8x8xf32> -> vector<8x8x8xf32>
    %76 = vector.extract_strided_slice %65 {offsets = [0, 0, 0], sizes = [2, 8, 8], strides = [1, 1, 1]} : vector<2x8x32xf32> to vector<2x8x8xf32>
    %77 = vector.extract_strided_slice %65 {offsets = [0, 0, 8], sizes = [2, 8, 8], strides = [1, 1, 1]} : vector<2x8x32xf32> to vector<2x8x8xf32>
    %78 = vector.extract_strided_slice %65 {offsets = [0, 0, 16], sizes = [2, 8, 8], strides = [1, 1, 1]} : vector<2x8x32xf32> to vector<2x8x8xf32>
    %79 = vector.extract_strided_slice %65 {offsets = [0, 0, 24], sizes = [2, 8, 8], strides = [1, 1, 1]} : vector<2x8x32xf32> to vector<2x8x8xf32>
    %80 = tpu.concatenate %76, %77, %78, %79 in 0 : vector<2x8x8xf32>, vector<2x8x8xf32>, vector<2x8x8xf32>, vector<2x8x8xf32> -> vector<8x8x8xf32>
    "tpu.trace_start"() <{level = 10 : i32, message = "bnd,bmd->bnm"}> : () -> ()
    %cst_23 = arith.constant dense<0.000000e+00> : vector<8x8x8xf32>
    %81 = tpu.matmul %70, %75, %cst_23 {dimension_numbers = #tpu.dot_dimension_numbers<[2], [2], [1], [1], [0, 0, 0, 1, 1, 1], [0], [0]>} : vector<8x8x8xf32>, vector<8x8x8xf32>, vector<8x8x8xf32> -> vector<8x8x8xf32>
    "tpu.trace_stop"() : () -> ()
    %cst_24 = arith.constant 0.353553385 : f32
    %82 = vector.broadcast %cst_24 : f32 to vector<8x8x8xf32>
    %83 = arith.mulf %81, %82 : vector<8x8x8xf32>
    %84 = vector.shape_cast %28 : vector<8x8xi1> to vector<1x8x8xi1>
    %cst_25 = arith.constant -1.000000e+30 : f32
    %85 = vector.shape_cast %84 : vector<1x8x8xi1> to vector<1x8x8xi1>
    %86 = vector.broadcast %85 : vector<1x8x8xi1> to vector<8x8x8xi1>
    %87 = vector.broadcast %cst_25 : f32 to vector<8x8x8xf32>
    %88 = arith.select %86, %83, %87 : vector<8x8x8xi1>, vector<8x8x8xf32>
    %cst_26 = arith.constant dense<0xFF800000> : vector<8x8xf32>
    %89 = vector.multi_reduction <maximumf>, %88, %cst_26 [2] : vector<8x8x8xf32> to vector<8x8xf32>
    %90 = vector.shape_cast %89 : vector<8x8xf32> to vector<8x8x1xf32>
    %91 = vector.broadcast %90 : vector<8x8x1xf32> to vector<8x8x8xf32>
    %92 = arith.subf %88, %91 : vector<8x8x8xf32>
    %93 = math.exp %92 : vector<8x8x8xf32>
    %cst_27 = arith.constant dense<0.000000e+00> : vector<8x8xf32>
    %94 = vector.multi_reduction <add>, %93, %cst_27 [2] : vector<8x8x8xf32> to vector<8x8xf32>
    %95 = vector.shape_cast %94 : vector<8x8xf32> to vector<8x8x1xf32>
    %96 = vector.broadcast %95 : vector<8x8x1xf32> to vector<8x8x8xf32>
    %97 = arith.divf %93, %96 : vector<8x8x8xf32>
    "tpu.trace_start"() <{level = 10 : i32, message = "bnm,bmd->bnd"}> : () -> ()
    %cst_28 = arith.constant dense<0.000000e+00> : vector<8x8x8xf32>
    %98 = tpu.matmul %97, %80, %cst_28 {dimension_numbers = #tpu.dot_dimension_numbers<[2], [1], [1], [2], [0, 0, 0, 1, 1, 2], [0], [0]>} : vector<8x8x8xf32>, vector<8x8x8xf32>, vector<8x8x8xf32> -> vector<8x8x8xf32>
    "tpu.trace_stop"() : () -> ()
    %99 = vector.extract_strided_slice %98 {offsets = [0, 0, 0], sizes = [2, 8, 8], strides = [1, 1, 1]} : vector<8x8x8xf32> to vector<2x8x8xf32>
    %100 = vector.extract_strided_slice %98 {offsets = [2, 0, 0], sizes = [2, 8, 8], strides = [1, 1, 1]} : vector<8x8x8xf32> to vector<2x8x8xf32>
    %101 = vector.extract_strided_slice %98 {offsets = [4, 0, 0], sizes = [2, 8, 8], strides = [1, 1, 1]} : vector<8x8x8xf32> to vector<2x8x8xf32>
    %102 = vector.extract_strided_slice %98 {offsets = [6, 0, 0], sizes = [2, 8, 8], strides = [1, 1, 1]} : vector<8x8x8xf32> to vector<2x8x8xf32>
    %103 = tpu.concatenate %99, %100, %101, %102 in 2 : vector<2x8x8xf32>, vector<2x8x8xf32>, vector<2x8x8xf32>, vector<2x8x8xf32> -> vector<2x8x32xf32>
    %104 = vector.shape_cast %103 : vector<2x8x32xf32> to vector<16x32xf32>
    %c0_29 = arith.constant 0 : index
    %c640_30 = arith.constant 640 : index
    %105 = vector.load %arg4[%c0_29, %c640_30] : memref<32x1408xf32, #tpu.memory_space<vmem>>, vector<32x32xf32>
    %cst_31 = arith.constant dense<0.000000e+00> : vector<16x32xf32>
    %106 = tpu.matmul %104, %105, %cst_31 {dimension_numbers = #tpu.dot_dimension_numbers<[1], [0], [0], [1], [0, 0, 1, 1], [], []>} : vector<16x32xf32>, vector<32x32xf32>, vector<16x32xf32> -> vector<16x32xf32>
    %c0_32 = arith.constant 0 : index
    %c768 = arith.constant 768 : index
    %107 = vector.load %arg6[%c0_32, %c768] : memref<1x1792xf32, #tpu.memory_space<vmem>>, vector<1x32xf32>
    %108 = vector.broadcast %107 : vector<1x32xf32> to vector<16x32xf32>
    %109 = arith.addf %106, %108 : vector<16x32xf32>
    %110 = arith.mulf %31, %109 : vector<16x32xf32>
    %111 = arith.addf %25, %110 : vector<16x32xf32>
    %cst_33 = arith.constant dense<0.000000e+00> : vector<16xf32>
    %112 = vector.multi_reduction <add>, %111, %cst_33 [1] : vector<16x32xf32> to vector<16xf32>
    %113 = vector.shape_cast %112 : vector<16xf32> to vector<16x1xf32>
    %cst_34 = arith.constant 3.200000e+01 : f32
    %114 = vector.broadcast %cst_34 : f32 to vector<16x1xf32>
    %115 = arith.divf %113, %114 : vector<16x1xf32>
    %116 = vector.broadcast %115 : vector<16x1xf32> to vector<16x32xf32>
    %117 = arith.subf %111, %116 : vector<16x32xf32>
    %118 = arith.mulf %117, %117 : vector<16x32xf32>
    %cst_35 = arith.constant dense<0.000000e+00> : vector<16xf32>
    %119 = vector.multi_reduction <add>, %118, %cst_35 [1] : vector<16x32xf32> to vector<16xf32>
    %120 = vector.shape_cast %119 : vector<16xf32> to vector<16x1xf32>
    %cst_36 = arith.constant 3.200000e+01 : f32
    %121 = vector.broadcast %cst_36 : f32 to vector<16x1xf32>
    %122 = arith.divf %120, %121 : vector<16x1xf32>
    %cst_37 = arith.constant 9.99999997E-7 : f32
    %123 = vector.broadcast %cst_37 : f32 to vector<16x1xf32>
    %124 = arith.addf %122, %123 : vector<16x1xf32>
    %125 = math.rsqrt %124 : vector<16x1xf32>
    %126 = vector.broadcast %125 : vector<16x1xf32> to vector<16x32xf32>
    %127 = arith.mulf %117, %126 : vector<16x32xf32>
    %cst_38 = arith.constant 1.000000e+00 : f32
    %128 = vector.broadcast %cst_38 : f32 to vector<16x32xf32>
    %129 = arith.addf %128, %33 : vector<16x32xf32>
    %130 = arith.mulf %127, %129 : vector<16x32xf32>
    %131 = arith.addf %130, %32 : vector<16x32xf32>
    %c0_39 = arith.constant 0 : index
    %c768_40 = arith.constant 768 : index
    %132 = vector.load %arg4[%c0_39, %c768_40] : memref<32x1408xf32, #tpu.memory_space<vmem>>, vector<32x64xf32>
    %cst_41 = arith.constant dense<0.000000e+00> : vector<16x64xf32>
    %133 = tpu.matmul %131, %132, %cst_41 {dimension_numbers = #tpu.dot_dimension_numbers<[1], [0], [0], [1], [0, 0, 1, 1], [], []>} : vector<16x32xf32>, vector<32x64xf32>, vector<16x64xf32> -> vector<16x64xf32>
    %c0_42 = arith.constant 0 : index
    %c896 = arith.constant 896 : index
    %134 = vector.load %arg6[%c0_42, %c896] : memref<1x1792xf32, #tpu.memory_space<vmem>>, vector<1x64xf32>
    %135 = vector.broadcast %134 : vector<1x64xf32> to vector<16x64xf32>
    %136 = arith.addf %133, %135 : vector<16x64xf32>
    %cst_43 = arith.constant 5.000000e-01 : f32
    %137 = vector.broadcast %cst_43 : f32 to vector<16x64xf32>
    %138 = arith.mulf %137, %136 : vector<16x64xf32>
    %cst_44 = arith.constant 4.471500e-02 : f32
    %139 = vector.broadcast %cst_44 : f32 to vector<16x64xf32>
    %140 = arith.mulf %139, %136 : vector<16x64xf32>
    %141 = arith.mulf %140, %136 : vector<16x64xf32>
    %142 = arith.mulf %141, %136 : vector<16x64xf32>
    %143 = arith.addf %136, %142 : vector<16x64xf32>
    %cst_45 = arith.constant 0.797884583 : f32
    %144 = vector.broadcast %cst_45 : f32 to vector<16x64xf32>
    %145 = arith.mulf %144, %143 : vector<16x64xf32>
    %146 = math.tanh %145 : vector<16x64xf32>
    %cst_46 = arith.constant 1.000000e+00 : f32
    %147 = vector.broadcast %cst_46 : f32 to vector<16x64xf32>
    %148 = arith.addf %147, %146 : vector<16x64xf32>
    %149 = arith.mulf %138, %148 : vector<16x64xf32>
    %c0_47 = arith.constant 0 : index
    %c0_48 = arith.constant 0 : index
    %150 = vector.load %arg5[%c0_47, %c0_48] : memref<64x256xf32, #tpu.memory_space<vmem>>, vector<64x32xf32>
    %cst_49 = arith.constant dense<0.000000e+00> : vector<16x32xf32>
    %151 = tpu.matmul %149, %150, %cst_49 {dimension_numbers = #tpu.dot_dimension_numbers<[1], [0], [0], [1], [0, 0, 1, 1], [], []>} : vector<16x64xf32>, vector<64x32xf32>, vector<16x32xf32> -> vector<16x32xf32>
    %c0_50 = arith.constant 0 : index
    %c1024 = arith.constant 1024 : index
    %152 = vector.load %arg6[%c0_50, %c1024] : memref<1x1792xf32, #tpu.memory_space<vmem>>, vector<1x32xf32>
    %153 = vector.broadcast %152 : vector<1x32xf32> to vector<16x32xf32>
    %154 = arith.addf %151, %153 : vector<16x32xf32>
    %155 = arith.mulf %34, %154 : vector<16x32xf32>
    %156 = arith.addf %111, %155 : vector<16x32xf32>
    %157 = vector.extract_strided_slice %22 {offsets = [0, 192], sizes = [16, 32], strides = [1, 1]} : vector<16x448xf32> to vector<16x32xf32>
    %158 = vector.extract_strided_slice %22 {offsets = [0, 224], sizes = [16, 32], strides = [1, 1]} : vector<16x448xf32> to vector<16x32xf32>
    %159 = vector.extract_strided_slice %22 {offsets = [0, 256], sizes = [16, 32], strides = [1, 1]} : vector<16x448xf32> to vector<16x32xf32>
    %160 = vector.extract_strided_slice %22 {offsets = [0, 288], sizes = [16, 32], strides = [1, 1]} : vector<16x448xf32> to vector<16x32xf32>
    %161 = vector.extract_strided_slice %22 {offsets = [0, 320], sizes = [16, 32], strides = [1, 1]} : vector<16x448xf32> to vector<16x32xf32>
    %162 = vector.extract_strided_slice %22 {offsets = [0, 352], sizes = [16, 32], strides = [1, 1]} : vector<16x448xf32> to vector<16x32xf32>
    %cst_51 = arith.constant dense<0.000000e+00> : vector<16xf32>
    %163 = vector.multi_reduction <add>, %156, %cst_51 [1] : vector<16x32xf32> to vector<16xf32>
    %164 = vector.shape_cast %163 : vector<16xf32> to vector<16x1xf32>
    %cst_52 = arith.constant 3.200000e+01 : f32
    %165 = vector.broadcast %cst_52 : f32 to vector<16x1xf32>
    %166 = arith.divf %164, %165 : vector<16x1xf32>
    %167 = vector.broadcast %166 : vector<16x1xf32> to vector<16x32xf32>
    %168 = arith.subf %156, %167 : vector<16x32xf32>
    %169 = arith.mulf %168, %168 : vector<16x32xf32>
    %cst_53 = arith.constant dense<0.000000e+00> : vector<16xf32>
    %170 = vector.multi_reduction <add>, %169, %cst_53 [1] : vector<16x32xf32> to vector<16xf32>
    %171 = vector.shape_cast %170 : vector<16xf32> to vector<16x1xf32>
    %cst_54 = arith.constant 3.200000e+01 : f32
    %172 = vector.broadcast %cst_54 : f32 to vector<16x1xf32>
    %173 = arith.divf %171, %172 : vector<16x1xf32>
    %cst_55 = arith.constant 9.99999997E-7 : f32
    %174 = vector.broadcast %cst_55 : f32 to vector<16x1xf32>
    %175 = arith.addf %173, %174 : vector<16x1xf32>
    %176 = math.rsqrt %175 : vector<16x1xf32>
    %177 = vector.broadcast %176 : vector<16x1xf32> to vector<16x32xf32>
    %178 = arith.mulf %168, %177 : vector<16x32xf32>
    %cst_56 = arith.constant 1.000000e+00 : f32
    %179 = vector.broadcast %cst_56 : f32 to vector<16x32xf32>
    %180 = arith.addf %179, %158 : vector<16x32xf32>
    %181 = arith.mulf %178, %180 : vector<16x32xf32>
    %182 = arith.addf %181, %157 : vector<16x32xf32>
    %c0_57 = arith.constant 0 : index
    %c896_58 = arith.constant 896 : index
    %183 = vector.load %arg4[%c0_57, %c896_58] : memref<32x1408xf32, #tpu.memory_space<vmem>>, vector<32x96xf32>
    %cst_59 = arith.constant dense<0.000000e+00> : vector<16x96xf32>
    %184 = tpu.matmul %182, %183, %cst_59 {dimension_numbers = #tpu.dot_dimension_numbers<[1], [0], [0], [1], [0, 0, 1, 1], [], []>} : vector<16x32xf32>, vector<32x96xf32>, vector<16x96xf32> -> vector<16x96xf32>
    %c0_60 = arith.constant 0 : index
    %c1152 = arith.constant 1152 : index
    %185 = vector.load %arg6[%c0_60, %c1152] : memref<1x1792xf32, #tpu.memory_space<vmem>>, vector<1x96xf32>
    %186 = vector.broadcast %185 : vector<1x96xf32> to vector<16x96xf32>
    %187 = arith.addf %184, %186 : vector<16x96xf32>
    %188 = vector.extract_strided_slice %187 {offsets = [0, 0], sizes = [16, 32], strides = [1, 1]} : vector<16x96xf32> to vector<16x32xf32>
    %189 = vector.shape_cast %188 : vector<16x32xf32> to vector<2x8x32xf32>
    %190 = vector.extract_strided_slice %187 {offsets = [0, 32], sizes = [16, 32], strides = [1, 1]} : vector<16x96xf32> to vector<16x32xf32>
    %191 = vector.shape_cast %190 : vector<16x32xf32> to vector<2x8x32xf32>
    %192 = vector.extract_strided_slice %187 {offsets = [0, 64], sizes = [16, 32], strides = [1, 1]} : vector<16x96xf32> to vector<16x32xf32>
    %193 = vector.shape_cast %192 : vector<16x32xf32> to vector<2x8x32xf32>
    %194 = vector.extract_strided_slice %189 {offsets = [0, 0, 0], sizes = [2, 8, 8], strides = [1, 1, 1]} : vector<2x8x32xf32> to vector<2x8x8xf32>
    %195 = vector.extract_strided_slice %189 {offsets = [0, 0, 8], sizes = [2, 8, 8], strides = [1, 1, 1]} : vector<2x8x32xf32> to vector<2x8x8xf32>
    %196 = vector.extract_strided_slice %189 {offsets = [0, 0, 16], sizes = [2, 8, 8], strides = [1, 1, 1]} : vector<2x8x32xf32> to vector<2x8x8xf32>
    %197 = vector.extract_strided_slice %189 {offsets = [0, 0, 24], sizes = [2, 8, 8], strides = [1, 1, 1]} : vector<2x8x32xf32> to vector<2x8x8xf32>
    %198 = tpu.concatenate %194, %195, %196, %197 in 0 : vector<2x8x8xf32>, vector<2x8x8xf32>, vector<2x8x8xf32>, vector<2x8x8xf32> -> vector<8x8x8xf32>
    %199 = vector.extract_strided_slice %191 {offsets = [0, 0, 0], sizes = [2, 8, 8], strides = [1, 1, 1]} : vector<2x8x32xf32> to vector<2x8x8xf32>
    %200 = vector.extract_strided_slice %191 {offsets = [0, 0, 8], sizes = [2, 8, 8], strides = [1, 1, 1]} : vector<2x8x32xf32> to vector<2x8x8xf32>
    %201 = vector.extract_strided_slice %191 {offsets = [0, 0, 16], sizes = [2, 8, 8], strides = [1, 1, 1]} : vector<2x8x32xf32> to vector<2x8x8xf32>
    %202 = vector.extract_strided_slice %191 {offsets = [0, 0, 24], sizes = [2, 8, 8], strides = [1, 1, 1]} : vector<2x8x32xf32> to vector<2x8x8xf32>
    %203 = tpu.concatenate %199, %200, %201, %202 in 0 : vector<2x8x8xf32>, vector<2x8x8xf32>, vector<2x8x8xf32>, vector<2x8x8xf32> -> vector<8x8x8xf32>
    %204 = vector.extract_strided_slice %193 {offsets = [0, 0, 0], sizes = [2, 8, 8], strides = [1, 1, 1]} : vector<2x8x32xf32> to vector<2x8x8xf32>
    %205 = vector.extract_strided_slice %193 {offsets = [0, 0, 8], sizes = [2, 8, 8], strides = [1, 1, 1]} : vector<2x8x32xf32> to vector<2x8x8xf32>
    %206 = vector.extract_strided_slice %193 {offsets = [0, 0, 16], sizes = [2, 8, 8], strides = [1, 1, 1]} : vector<2x8x32xf32> to vector<2x8x8xf32>
    %207 = vector.extract_strided_slice %193 {offsets = [0, 0, 24], sizes = [2, 8, 8], strides = [1, 1, 1]} : vector<2x8x32xf32> to vector<2x8x8xf32>
    %208 = tpu.concatenate %204, %205, %206, %207 in 0 : vector<2x8x8xf32>, vector<2x8x8xf32>, vector<2x8x8xf32>, vector<2x8x8xf32> -> vector<8x8x8xf32>
    "tpu.trace_start"() <{level = 10 : i32, message = "bnd,bmd->bnm"}> : () -> ()
    %cst_61 = arith.constant dense<0.000000e+00> : vector<8x8x8xf32>
    %209 = tpu.matmul %198, %203, %cst_61 {dimension_numbers = #tpu.dot_dimension_numbers<[2], [2], [1], [1], [0, 0, 0, 1, 1, 1], [0], [0]>} : vector<8x8x8xf32>, vector<8x8x8xf32>, vector<8x8x8xf32> -> vector<8x8x8xf32>
    "tpu.trace_stop"() : () -> ()
    %cst_62 = arith.constant 0.353553385 : f32
    %210 = vector.broadcast %cst_62 : f32 to vector<8x8x8xf32>
    %211 = arith.mulf %209, %210 : vector<8x8x8xf32>
    %212 = vector.shape_cast %28 : vector<8x8xi1> to vector<1x8x8xi1>
    %cst_63 = arith.constant -1.000000e+30 : f32
    %213 = vector.shape_cast %212 : vector<1x8x8xi1> to vector<1x8x8xi1>
    %214 = vector.broadcast %213 : vector<1x8x8xi1> to vector<8x8x8xi1>
    %215 = vector.broadcast %cst_63 : f32 to vector<8x8x8xf32>
    %216 = arith.select %214, %211, %215 : vector<8x8x8xi1>, vector<8x8x8xf32>
    %cst_64 = arith.constant dense<0xFF800000> : vector<8x8xf32>
    %217 = vector.multi_reduction <maximumf>, %216, %cst_64 [2] : vector<8x8x8xf32> to vector<8x8xf32>
    %218 = vector.shape_cast %217 : vector<8x8xf32> to vector<8x8x1xf32>
    %219 = vector.broadcast %218 : vector<8x8x1xf32> to vector<8x8x8xf32>
    %220 = arith.subf %216, %219 : vector<8x8x8xf32>
    %221 = math.exp %220 : vector<8x8x8xf32>
    %cst_65 = arith.constant dense<0.000000e+00> : vector<8x8xf32>
    %222 = vector.multi_reduction <add>, %221, %cst_65 [2] : vector<8x8x8xf32> to vector<8x8xf32>
    %223 = vector.shape_cast %222 : vector<8x8xf32> to vector<8x8x1xf32>
    %224 = vector.broadcast %223 : vector<8x8x1xf32> to vector<8x8x8xf32>
    %225 = arith.divf %221, %224 : vector<8x8x8xf32>
    "tpu.trace_start"() <{level = 10 : i32, message = "bnm,bmd->bnd"}> : () -> ()
    %cst_66 = arith.constant dense<0.000000e+00> : vector<8x8x8xf32>
    %226 = tpu.matmul %225, %208, %cst_66 {dimension_numbers = #tpu.dot_dimension_numbers<[2], [1], [1], [2], [0, 0, 0, 1, 1, 2], [0], [0]>} : vector<8x8x8xf32>, vector<8x8x8xf32>, vector<8x8x8xf32> -> vector<8x8x8xf32>
    "tpu.trace_stop"() : () -> ()
    %227 = vector.extract_strided_slice %226 {offsets = [0, 0, 0], sizes = [2, 8, 8], strides = [1, 1, 1]} : vector<8x8x8xf32> to vector<2x8x8xf32>
    %228 = vector.extract_strided_slice %226 {offsets = [2, 0, 0], sizes = [2, 8, 8], strides = [1, 1, 1]} : vector<8x8x8xf32> to vector<2x8x8xf32>
    %229 = vector.extract_strided_slice %226 {offsets = [4, 0, 0], sizes = [2, 8, 8], strides = [1, 1, 1]} : vector<8x8x8xf32> to vector<2x8x8xf32>
    %230 = vector.extract_strided_slice %226 {offsets = [6, 0, 0], sizes = [2, 8, 8], strides = [1, 1, 1]} : vector<8x8x8xf32> to vector<2x8x8xf32>
    %231 = tpu.concatenate %227, %228, %229, %230 in 2 : vector<2x8x8xf32>, vector<2x8x8xf32>, vector<2x8x8xf32>, vector<2x8x8xf32> -> vector<2x8x32xf32>
    %232 = vector.shape_cast %231 : vector<2x8x32xf32> to vector<16x32xf32>
    %c0_67 = arith.constant 0 : index
    %c1024_68 = arith.constant 1024 : index
    %233 = vector.load %arg4[%c0_67, %c1024_68] : memref<32x1408xf32, #tpu.memory_space<vmem>>, vector<32x32xf32>
    %cst_69 = arith.constant dense<0.000000e+00> : vector<16x32xf32>
    %234 = tpu.matmul %232, %233, %cst_69 {dimension_numbers = #tpu.dot_dimension_numbers<[1], [0], [0], [1], [0, 0, 1, 1], [], []>} : vector<16x32xf32>, vector<32x32xf32>, vector<16x32xf32> -> vector<16x32xf32>
    %c0_70 = arith.constant 0 : index
    %c1280 = arith.constant 1280 : index
    %235 = vector.load %arg6[%c0_70, %c1280] : memref<1x1792xf32, #tpu.memory_space<vmem>>, vector<1x32xf32>
    %236 = vector.broadcast %235 : vector<1x32xf32> to vector<16x32xf32>
    %237 = arith.addf %234, %236 : vector<16x32xf32>
    %238 = arith.mulf %159, %237 : vector<16x32xf32>
    %239 = arith.addf %156, %238 : vector<16x32xf32>
    %cst_71 = arith.constant dense<0.000000e+00> : vector<16xf32>
    %240 = vector.multi_reduction <add>, %239, %cst_71 [1] : vector<16x32xf32> to vector<16xf32>
    %241 = vector.shape_cast %240 : vector<16xf32> to vector<16x1xf32>
    %cst_72 = arith.constant 3.200000e+01 : f32
    %242 = vector.broadcast %cst_72 : f32 to vector<16x1xf32>
    %243 = arith.divf %241, %242 : vector<16x1xf32>
    %244 = vector.broadcast %243 : vector<16x1xf32> to vector<16x32xf32>
    %245 = arith.subf %239, %244 : vector<16x32xf32>
    %246 = arith.mulf %245, %245 : vector<16x32xf32>
    %cst_73 = arith.constant dense<0.000000e+00> : vector<16xf32>
    %247 = vector.multi_reduction <add>, %246, %cst_73 [1] : vector<16x32xf32> to vector<16xf32>
    %248 = vector.shape_cast %247 : vector<16xf32> to vector<16x1xf32>
    %cst_74 = arith.constant 3.200000e+01 : f32
    %249 = vector.broadcast %cst_74 : f32 to vector<16x1xf32>
    %250 = arith.divf %248, %249 : vector<16x1xf32>
    %cst_75 = arith.constant 9.99999997E-7 : f32
    %251 = vector.broadcast %cst_75 : f32 to vector<16x1xf32>
    %252 = arith.addf %250, %251 : vector<16x1xf32>
    %253 = math.rsqrt %252 : vector<16x1xf32>
    %254 = vector.broadcast %253 : vector<16x1xf32> to vector<16x32xf32>
    %255 = arith.mulf %245, %254 : vector<16x32xf32>
    %cst_76 = arith.constant 1.000000e+00 : f32
    %256 = vector.broadcast %cst_76 : f32 to vector<16x32xf32>
    %257 = arith.addf %256, %161 : vector<16x32xf32>
    %258 = arith.mulf %255, %257 : vector<16x32xf32>
    %259 = arith.addf %258, %160 : vector<16x32xf32>
    %c0_77 = arith.constant 0 : index
    %c1152_78 = arith.constant 1152 : index
    %260 = vector.load %arg4[%c0_77, %c1152_78] : memref<32x1408xf32, #tpu.memory_space<vmem>>, vector<32x64xf32>
    %cst_79 = arith.constant dense<0.000000e+00> : vector<16x64xf32>
    %261 = tpu.matmul %259, %260, %cst_79 {dimension_numbers = #tpu.dot_dimension_numbers<[1], [0], [0], [1], [0, 0, 1, 1], [], []>} : vector<16x32xf32>, vector<32x64xf32>, vector<16x64xf32> -> vector<16x64xf32>
    %c0_80 = arith.constant 0 : index
    %c1408 = arith.constant 1408 : index
    %262 = vector.load %arg6[%c0_80, %c1408] : memref<1x1792xf32, #tpu.memory_space<vmem>>, vector<1x64xf32>
    %263 = vector.broadcast %262 : vector<1x64xf32> to vector<16x64xf32>
    %264 = arith.addf %261, %263 : vector<16x64xf32>
    %cst_81 = arith.constant 5.000000e-01 : f32
    %265 = vector.broadcast %cst_81 : f32 to vector<16x64xf32>
    %266 = arith.mulf %265, %264 : vector<16x64xf32>
    %cst_82 = arith.constant 4.471500e-02 : f32
    %267 = vector.broadcast %cst_82 : f32 to vector<16x64xf32>
    %268 = arith.mulf %267, %264 : vector<16x64xf32>
    %269 = arith.mulf %268, %264 : vector<16x64xf32>
    %270 = arith.mulf %269, %264 : vector<16x64xf32>
    %271 = arith.addf %264, %270 : vector<16x64xf32>
    %cst_83 = arith.constant 0.797884583 : f32
    %272 = vector.broadcast %cst_83 : f32 to vector<16x64xf32>
    %273 = arith.mulf %272, %271 : vector<16x64xf32>
    %274 = math.tanh %273 : vector<16x64xf32>
    %cst_84 = arith.constant 1.000000e+00 : f32
    %275 = vector.broadcast %cst_84 : f32 to vector<16x64xf32>
    %276 = arith.addf %275, %274 : vector<16x64xf32>
    %277 = arith.mulf %266, %276 : vector<16x64xf32>
    %c0_85 = arith.constant 0 : index
    %c128_86 = arith.constant 128 : index
    %278 = vector.load %arg5[%c0_85, %c128_86] : memref<64x256xf32, #tpu.memory_space<vmem>>, vector<64x32xf32>
    %cst_87 = arith.constant dense<0.000000e+00> : vector<16x32xf32>
    %279 = tpu.matmul %277, %278, %cst_87 {dimension_numbers = #tpu.dot_dimension_numbers<[1], [0], [0], [1], [0, 0, 1, 1], [], []>} : vector<16x64xf32>, vector<64x32xf32>, vector<16x32xf32> -> vector<16x32xf32>
    %c0_88 = arith.constant 0 : index
    %c1536 = arith.constant 1536 : index
    %280 = vector.load %arg6[%c0_88, %c1536] : memref<1x1792xf32, #tpu.memory_space<vmem>>, vector<1x32xf32>
    %281 = vector.broadcast %280 : vector<1x32xf32> to vector<16x32xf32>
    %282 = arith.addf %279, %281 : vector<16x32xf32>
    %283 = arith.mulf %162, %282 : vector<16x32xf32>
    %284 = arith.addf %239, %283 : vector<16x32xf32>
    %285 = vector.extract_strided_slice %22 {offsets = [0, 384], sizes = [16, 32], strides = [1, 1]} : vector<16x448xf32> to vector<16x32xf32>
    %286 = vector.extract_strided_slice %22 {offsets = [0, 416], sizes = [16, 32], strides = [1, 1]} : vector<16x448xf32> to vector<16x32xf32>
    %cst_89 = arith.constant dense<0.000000e+00> : vector<16xf32>
    %287 = vector.multi_reduction <add>, %284, %cst_89 [1] : vector<16x32xf32> to vector<16xf32>
    %288 = vector.shape_cast %287 : vector<16xf32> to vector<16x1xf32>
    %cst_90 = arith.constant 3.200000e+01 : f32
    %289 = vector.broadcast %cst_90 : f32 to vector<16x1xf32>
    %290 = arith.divf %288, %289 : vector<16x1xf32>
    %291 = vector.broadcast %290 : vector<16x1xf32> to vector<16x32xf32>
    %292 = arith.subf %284, %291 : vector<16x32xf32>
    %293 = arith.mulf %292, %292 : vector<16x32xf32>
    %cst_91 = arith.constant dense<0.000000e+00> : vector<16xf32>
    %294 = vector.multi_reduction <add>, %293, %cst_91 [1] : vector<16x32xf32> to vector<16xf32>
    %295 = vector.shape_cast %294 : vector<16xf32> to vector<16x1xf32>
    %cst_92 = arith.constant 3.200000e+01 : f32
    %296 = vector.broadcast %cst_92 : f32 to vector<16x1xf32>
    %297 = arith.divf %295, %296 : vector<16x1xf32>
    %cst_93 = arith.constant 9.99999997E-7 : f32
    %298 = vector.broadcast %cst_93 : f32 to vector<16x1xf32>
    %299 = arith.addf %297, %298 : vector<16x1xf32>
    %300 = math.rsqrt %299 : vector<16x1xf32>
    %301 = vector.broadcast %300 : vector<16x1xf32> to vector<16x32xf32>
    %302 = arith.mulf %292, %301 : vector<16x32xf32>
    %cst_94 = arith.constant 1.000000e+00 : f32
    %303 = vector.broadcast %cst_94 : f32 to vector<16x32xf32>
    %304 = arith.addf %303, %286 : vector<16x32xf32>
    %305 = arith.mulf %302, %304 : vector<16x32xf32>
    %306 = arith.addf %305, %285 : vector<16x32xf32>
    %c0_95 = arith.constant 0 : index
    %c1280_96 = arith.constant 1280 : index
    %307 = vector.load %arg4[%c0_95, %c1280_96] : memref<32x1408xf32, #tpu.memory_space<vmem>>, vector<32x2xf32>
    %cst_97 = arith.constant dense<0.000000e+00> : vector<16x2xf32>
    %308 = tpu.matmul %306, %307, %cst_97 {dimension_numbers = #tpu.dot_dimension_numbers<[1], [0], [0], [1], [0, 0, 1, 1], [], []>} : vector<16x32xf32>, vector<32x2xf32>, vector<16x2xf32> -> vector<16x2xf32>
    %c0_98 = arith.constant 0 : index
    %c1664 = arith.constant 1664 : index
    %309 = vector.load %arg6[%c0_98, %c1664] : memref<1x1792xf32, #tpu.memory_space<vmem>>, vector<1x2xf32>
    %310 = vector.broadcast %309 : vector<1x2xf32> to vector<16x2xf32>
    %311 = arith.addf %308, %310 : vector<16x2xf32>
    %312 = math.tanh %311 : vector<16x2xf32>
    %cst_99 = arith.constant 1.000000e+00 : f32
    %313 = vector.broadcast %cst_99 : f32 to vector<16x2xf32>
    %314 = arith.mulf %313, %312 : vector<16x2xf32>
    %c0_100 = arith.constant 0 : index
    %c0_101 = arith.constant 0 : index
    %315 = vector.load %arg7[%c0_100, %c0_101] : memref<16x2xf32, #tpu.memory_space<vmem>>, vector<16x2xf32>
    tpu.vector_store %arg7[%c0_100, %c0_101], %314 {strides = array<i32>} : memref<16x2xf32, #tpu.memory_space<vmem>>, vector<16x2xf32>,
    return
  }
  func.func @transform_0(%arg0: i32) -> (i32, i32) {
    %c0_i32 = arith.constant 0 : i32
    %c0_i32_0 = arith.constant 0 : i32
    return %arg0, %c0_i32 : i32, i32
  }
  func.func @transform_1(%arg0: i32) -> (i32, i32) {
    %c0_i32 = arith.constant 0 : i32
    %c0_i32_0 = arith.constant 0 : i32
    return %arg0, %c0_i32 : i32, i32
  }
  func.func @transform_2(%arg0: i32) -> (i32, i32) {
    %c0_i32 = arith.constant 0 : i32
    %c0_i32_0 = arith.constant 0 : i32
    %c0_i32_1 = arith.constant 0 : i32
    return %c0_i32, %c0_i32_0 : i32, i32
  }
  func.func @transform_3(%arg0: i32) -> (i32, i32) {
    %c0_i32 = arith.constant 0 : i32
    %c0_i32_0 = arith.constant 0 : i32
    %c0_i32_1 = arith.constant 0 : i32
    return %c0_i32, %c0_i32_0 : i32, i32
  }
  func.func @transform_4(%arg0: i32) -> (i32, i32) {
    %c0_i32 = arith.constant 0 : i32
    %c0_i32_0 = arith.constant 0 : i32
    %c0_i32_1 = arith.constant 0 : i32
    return %c0_i32, %c0_i32_0 : i32, i32
  }
  func.func @transform_5(%arg0: i32) -> (i32, i32) {
    %c0_i32 = arith.constant 0 : i32
    %c0_i32_0 = arith.constant 0 : i32
    %c0_i32_1 = arith.constant 0 : i32
    return %c0_i32, %c0_i32_0 : i32, i32
  }
  func.func @transform_6(%arg0: i32) -> (i32, i32) {
    %c0_i32 = arith.constant 0 : i32
    %c0_i32_0 = arith.constant 0 : i32
    return %arg0, %c0_i32 : i32, i32
  }
}

</mosaic_0001>

<bundles_post_ra>
// kernel: transformer_forward.1
= control target key start
LH: loop header
LB: loop body
LE: loop exit
PB: predicated region body
PF: predicated region fallthrough
CT: control target
= control target key end

     0   :  { %11 = vsyncpa [#allocation3], 0  ;;  %s5862_s0 = inlined_call_operand.vmem [shape: f32[16,6], index: 0, kind: input, shape index: {}]   ;;  %s5863_s1 = inlined_call_operand.vmem [shape: s32[16,1], index: 1, kind: input, shape index: {}]   ;;  %s5864_s2 = inlined_call_operand.vmem [shape: f32[14,32], index: 2, kind: input, shape index: {}]   ;;  %s5865_s3 = inlined_call_operand.hbm [shape: f32[32,1408], index: 3, kind: input, shape index: {}]   ;;  %s5866_s4 = inlined_call_operand.hbm [shape: f32[64,256], index: 4, kind: input, shape index: {}]   ;;  %s5867_s5 = inlined_call_operand.vmem [shape: f32[1,1792], index: 5, kind: input, shape index: {}]   ;;  %s5868_s6 = inlined_call_operand.vmem [shape: f32[16,2], index: 6, kind: output, shape index: {}]  }
   0x1   :  { %12 = vsyncpa [#allocation5], 0  ;;  %s5125_s21 = smov [#allocation2]   ;;  %s5077_s25 = scalar_lea.hbm %s5865_s3, 5632 }
   0x2   :  { %s24_s22 = sshll.u32 %s5125_s21, 4  ;;  %p5078_p0 = scmp.ne.s32.totalorder %s5865_s3, %s5077_s25  ;;  %s25_s22 = int_to_ptr.vmem [resolvable:$true] %s24_s22 }
   0x3   :  { %p5081_p1 = scmp.lt.u32.totalorder %s5077_s25, %s5865_s3 }
   0x5   :  { %p5083_p2 = pnand %p5081_p1, %p5078_p0 }
   0x7   :  { %5086 = shalt.err (!%p5083_p2)
}
   0x8   :  { %s5087_s30 = scalar_lea.vmem %s25_s22, 5632  ;;  %p5092_p4 = scmp.lt.s32.totalorder %s25_s22, %s25_s22 }
   0x9   :  { %p5088_p3 = scmp.ne.s32.totalorder %s25_s22, %s5087_s30  ;;  %p5093_p5 = scmp.lt.s32.totalorder %s5087_s30, %s5087_s30 }
   0xb   :  { %p5094_p6 = por %p5093_p5, %p5092_p4 }
   0xd   :  { %p5095_p7 = pnand %p5094_p6, %p5088_p3 }
   0xf   :  { %5098 = shalt.err (!%p5095_p7)
}
  0x10   :  { %s5126_s7 = smov 1408   ;;  %s5127_s8 = smov 88  }
  0x11   :  { %30 = dma.hbm_to_vmem [thread:$0]  %s5865_s3, 5632, %s25_s22, [#allocation3], %s5126_s7, %s5126_s7, %s5127_s8  }
  0x12   :  { %s5128_s11 = smov [#allocation4]   ;;  %s5099_s15 = scalar_lea.hbm %s5866_s4, 2048 }
  0x13   :  { %s36_s12 = sshll.u32 %s5128_s11, 4  ;;  %p5100_p8 = scmp.ne.s32.totalorder %s5866_s4, %s5099_s15  ;;  %s37_s12 = int_to_ptr.vmem [resolvable:$true] %s36_s12 }
  0x14   :  { %p5103_p9 = scmp.lt.u32.totalorder %s5099_s15, %s5866_s4 }
  0x16   :  { %p5105_p10 = pnand %p5103_p9, %p5100_p8 }
  0x18   :  { %5108 = shalt.err (!%p5105_p10)
}
  0x19   :  { %s5109_s20 = scalar_lea.vmem %s37_s12, 2048  ;;  %p5114_p12 = scmp.lt.s32.totalorder %s37_s12, %s37_s12 }
  0x1a   :  { %p5110_p11 = scmp.ne.s32.totalorder %s37_s12, %s5109_s20  ;;  %p5115_p13 = scmp.lt.s32.totalorder %s5109_s20, %s5109_s20 }
  0x1c   :  { %p5116_p0 = por %p5115_p13, %p5114_p12 }
  0x1e   :  { %p5117_p1 = pnand %p5116_p0, %p5110_p11 }
  0x20   :  { %5120 = shalt.err (!%p5117_p1)
}
  0x21   :  { %s5129_s3 = smov 256   ;;  %s5130_s21 = smov 16  }
  0x22   :  { %42 = dma.hbm_to_vmem [thread:$0]  %s5866_s4, 2048, %s37_s12, [#allocation5], %s5129_s3, %s5129_s3, %s5130_s21  }
  0x23   :  { %5121 = dma.done.wait [#allocation3], 5632  }
  0x24   :  { %5122 = vsyncadd [#allocation3], 4294961664 }
  0x25   :  { %5123 = dma.done.wait [#allocation5], 2048  }
  0x26   :  { %5124 = vsyncadd [#allocation5], 4294965248  ;;  %v5131_v0 = vmov 0   ;;  %v5132_v1 = vmov 0.0   ;;  %vm78_vm0 = vcmask 1045504   ;;  %vm71_vm1 = vcmask 48128  }
  0x27   :  { %4973 = vset.pattern.permute.xlu0 %v5131_v0  ;;  %362 = vmatprep.mubr.f32.mxu1 %v5132_v1  ;;  %v53_v2 = vld [vmem:[%s5863_s1] sm:$0xff]  ;;  %v70_v3 = vld [vmem:[%s5864_s2 + $0x8] sm:$0x3f]  ;;  %vm291_vm2 = vcmask 261120   ;;  %v55_v10 = vlaneseq  ;;  %vm157_vm3 = vcmask 64512   ;;  %v256_v18 = vld [vmem:[#allocation2 + $0x18] sm:$0xff] }
  0x28   :  { %58 = vperm.xlu0 %4973, %v53_v2   ;;  %4565 = vmatprep.subr.msk.mxu0 %vm78_vm0, %v70_v3  ;;  %v51_v4 = vld [vmem:[%s5862_s0] sm:$0xff]  ;;  %v52_v5 = vld [vmem:[%s5862_s0 + $0x8] sm:$0xff]  ;;  %v260_v20 = vld [vmem:[#allocation2 + $0x70] sm:$0xff]  ;;  %vm5134_vm6 = vmmov 0   ;;  %s5135_s15 = smov 120   ;;  %s5136_s16 = smov 104  }
  0x29   :  { %v69_v6 = vld [vmem:[%s5864_s2] sm:$0xff]  ;;  %v54_v7 = vld [vmem:[%s5863_s1 + $0x8] sm:$0xff]  ;;  %4566 = vmatpush3.msk.msra.mxu0 %vm78_vm0, %v70_v3  ;;  %4567 = vmatprep.mubr.msk.f32.mxu0 %vm71_vm1, %v51_v4  ;;  %v5229_v11 = vand.u32 127, %v55_v10  ;;  %v257_v22 = vld [vmem:[#allocation2 + $0x58] sm:$0xff]  ;;  %v4858_v23 = vpack.c.bf16 %v260_v20, %v256_v18  ;;  %v5248_v57 = vshrl.u32 %v55_v10, 7  ;;  %s5133_s2 = smov 96  }
  0x2a   :  { %4568 = vmatmul.mubr.msk.f32.vlgmr.msra.gmra.mrb[0].mxu0 %vm71_vm1, %v52_v5  ;;  %4570 = vmatprep.subr.mxu0 %v69_v6  ;;  %v5224_v8 = vld [vmem:[%s5867_s5] ss:$0 sm:$0xff]  ;;  %v254_v16 = vld [vmem:[#allocation2 + $0x8] sm:$0xff]  ;;  %v255_v25 = vld [vmem:[#allocation2 + $0x10] sm:$0xff]  ;;  %s5137_s17 = smov 112   ;;  %s5138_s18 = smov 64  }
  0x2b   :  { %4571 = vmatpush3.msra.mxu0 %v69_v6  ;;  %v462_v9 = vsel %vm291_vm2, %v5224_v8, 0.0  ;;  %v258_v17 = vld [vmem:[#allocation2 + $0x60] sm:$0xff]  ;;  %v259_v26 = vld [vmem:[#allocation2 + $0x68] sm:$0xff]  ;;  %v262_v28 = vld [vmem:[#allocation2 + $0xb8] sm:$0xff]  ;;  %v273_v61 = vsub.s32 0, %v5248_v57  ;;  %vm5383_vm7 = vcmp.ge.s32.totalorder %v5248_v57, %v5229_v11  ;;  %s5139_s19 = smov 8  }
  0x2c   :  { %61 = vperm.xlu0 %4973, %v54_v7   ;;  %463 = vadd.xlane.f32.xlu1 %v462_v9  ;;  %v4850_v19 = vpack.c.bf16 %v258_v17, %v254_v16  ;;  %v253_v21 = vld [vmem:[#allocation2] sm:$0xff]  ;;  %v4860_v27 = vpack.c.bf16 %v259_v26, %v255_v25  ;;  %v266_v29 = vld [vmem:[#allocation2 + $0x110] sm:$0xff]  ;;  %v264_v30 = vld [vmem:[#allocation2 + $0xc8] sm:$0xff]  ;;  %s5140_s20 = smov 24   ;;  %vm1944_vm8 = vcmask 130048   ;;  %vm1947_vm9 = vcmask 195584  }
  0x2d   :  { %v4852_v24 = vpack.c.bf16 %v257_v22, %v253_v21  ;;  %4859 = vmatprep.subr.bf16.mxu0 %v4858_v23  ;;  %v4854_v31 = vpack.c.bf16 %v266_v29, %v262_v28  ;;  %v268_v32 = vld [vmem:[#allocation2 + $0x120] sm:$0xff]  ;;  %v261_v33 = vld [vmem:[#allocation2 + $0xb0] sm:$0xff]  ;;  %v265_v34 = vld [vmem:[#allocation2 + $0x108] sm:$0xff]  ;;  %s5141_s23 = smov 32   ;;  %vm2227_vm10 = vcmask 523264   ;;  %vm4335_vm11 = vcmask 15360  }
  0x2e   :  { %4851 = vmatprep.subr.bf16.mxu1 %v4850_v19  ;;  %v4862_v35 = vpack.c.bf16 %v268_v32, %v264_v30  ;;  %v4856_v36 = vpack.c.bf16 %v265_v34, %v261_v33  ;;  %v263_v37 = vld [vmem:[#allocation2 + $0xc0] sm:$0xff]  ;;  %v267_v38 = vld [vmem:[#allocation2 + $0x118] sm:$0xff]  ;;  %v492_v62 = vld [vmem:[#allocation2 + $0xd0] sm:$0xff] }
  0x2f   :  { %4853 = vmatpush1.bf16.msra.mxu1 %v4852_v24  ;;  %v4864_v39 = vpack.c.bf16 %v267_v38, %v263_v37  ;;  %v490_v58 = vld [vmem:[#allocation2 + $0x20] sm:$0xff]  ;;  %v491_v59 = vld [vmem:[#allocation2 + $0x78] sm:$0xff]  ;;  %v493_v63 = vld [vmem:[#allocation2 + $0x128] sm:$0xff] }
  0x30   :  { %4855 = vmatprep.subr.bf16.mxu1 %v4854_v31  ;;  %v4866_v60 = vpack.c.bf16 %v491_v59, %v490_v58  ;;  %v5254_v0 = vld [vmem:[%s5867_s5 + $0x1] sm:$0xf]  ;;  %v4870_v2 = vpack.c.bf16 %v493_v63, %v492_v62  ;;  %v4358_v29 = vld [vmem:[%s5867_s5 + $0x5] ss:$0 sm:$0xff] }
  0x31   :  { %v274_v3 = vrot.slane %v5254_v0, %v273_v61 }
  0x33   :  { %4857 = vmatpush1.bf16.msra.mxu1 %v4856_v36 }
  0x34   :  { %4586 = vmatprep.subr.mxu1 %v5132_v1 }
  0xa7   :  { %v59_v12 = vpop.permute.xlu0 %58 }
  0xa8   :  { %vm63_vm4 = vcmp.eq.s32.totalorder %v59_v12, %v5229_v11 }
  0xa9   :  { %v4344_v13 = vsel %vm63_vm4, 1.0, %v5132_v1 }
  0xaa   :  { %4572 = vmatprep.mubr.msk.f32.mxu0 %vm157_vm3, %v4344_v13 }
  0xab   :  { %v62_v14 = vpop.permute.xlu0 %61 }
  0xac   :  { %vm64_vm5 = vcmp.eq.s32.totalorder %v62_v14, %v5229_v11 }
  0xad   :  { %v4345_v15 = vsel %vm64_vm5, 1.0, %v5132_v1 }
  0xae   :  { %4573 = vmatmul.mubr.msk.f32.vlgmr.msra.gmra.mrb[0].mxu0 %vm157_vm3, %v4345_v15 }
  0xaf   :  { %439 = vmatprep.mubr.f32.mxu0 %v5132_v1  ;;  %4861 = vmatpush1.bf16.msra.mxu0 %v4860_v27 }
  0xb0   :  { %4863 = vmatprep.subr.bf16.mxu0 %v4862_v35 }
  0xb3   :  { %4865 = vmatpush1.bf16.msra.mxu0 %v4864_v39 }
  0xb4   :  { %4867 = vmatprep.subr.bf16.mxu0 %v4866_v60 }
  0xb9   :  { %v464_v40 = vpop.xlane.xlu1 %463 }
  0xba   :  { %v466_v41 = vmul.f32 0.03125, %v464_v40 }
  0xbc   :  { %v467_v42 = vsub.f32 %v5224_v8, %v466_v41 }
  0xbe   :  { %v468_v43 = vmul.f32 %v467_v42, %v467_v42 }
  0xc0   :  { %v469_v44 = vsel %vm291_vm2, %v468_v43, 0.0 }
  0xc1   :  { %470 = vadd.xlane.f32.xlu1 %v469_v44 }
 0x14e   :  { %v471_v18 = vpop.xlane.xlu1 %470 }
 0x14f   :  { %v472_v19 = vmul.f32 0.03125, %v471_v18 }
 0x151   :  { %v473_v20 = vadd.f32 1e-06, %v472_v19 }
 0x181   :  { %v4574_v45 = vpop.f32.mrb[0].mxu0 }
 0x182   :  { %v4352_v46 = vmul.f32 -1.442695, %v4574_v45  ;;  %v230_v47 = vpop.f32.mrb[1].mxu0 }
 0x183   :  { %v4351_v48 = vmul.f32 -1.442695, %v230_v47 }
 0x184   :  { %4974 = vpow2.f32 %v4352_v46 }
 0x185   :  { %4976 = vpow2.f32 %v4351_v48 }
 0x18e   :  { %v4975_v49 = vpop.eup %4974 }
 0x18f   :  { %v4977_v50 = vpop.eup %4976  ;;  %v246_v51 = vadd.f32 1.0, %v4975_v49 }
 0x190   :  { %v245_v52 = vadd.f32 1.0, %v4977_v50 }
 0x192   :  { %4978 = vrcp.f32 %v245_v52 }
 0x193   :  { %4980 = vrcp.f32 %v246_v51 }
 0x194   :  { %4982 = vrsqrt.f32 %v473_v20 }
 0x19c   :  { %v4979_v53 = vpop.eup %4978 }
 0x19d   :  { %v251_v54 = vmul.f32 %v4979_v53, %v230_v47  ;;  %v4981_v55 = vpop.eup %4980 }
 0x19e   :  { %v252_v56 = vmul.f32 %v4981_v55, %v4574_v45  ;;  %v4983_v21 = vpop.eup %4982 }
 0x19f   :  { %4353 = vmatmul.mubr.msk.f32.vlgmr.msra.gmra.mrb[0].mxu1 %vm291_vm2, %v251_v54  ;;  %4355 = vmatmul.mubr.msk.f32.vlgmr.msra.gmra.mrb[2].mxu0 %vm291_vm2, %v251_v54  ;;  %v475_v22 = vmul.f32 %v4983_v21, %v467_v42 }
 0x1a0   :  { %368 = vmatprep.mubr.f32.mxu1 %v5132_v1  ;;  %445 = vmatprep.mubr.f32.mxu0 %v5132_v1 }
 0x1a1   :  { %4869 = vmatpush3.bf16.msra.mxu0 %v4866_v60 }
 0x1a2   :  { %4871 = vmatprep.subr.bf16.mxu0 %v4870_v2 }
 0x1a3   :  { %4354 = vmatmul.mubr.msk.f32.gmra.mrb[2].mxu1 %vm291_vm2, %v252_v56  ;;  %4356 = vmatmul.mubr.msk.f32.gmra.mrb[4].mxu0 %vm291_vm2, %v252_v56 }
 0x1a4   :  { %4588 = vmatprep.mubr.msk.f32.mxu1 %vm5134_vm6, %v5132_v1 }
 0x1a5   :  { %4873 = vmatpush3.bf16.msra.mxu0 %v4870_v2 }
 0x1a6   :  { %4591 = vmatprep.subr.mxu0 %v5132_v1 }
 0x272   :  { %v364_v4 = vpop.f32.mrb[0].mxu1  ;;  %v5258_v5 = vpop.f32.mrb[2].mxu0 }
 0x273   :  { %v5260_v6 = vadd.f32 %v364_v4, %v274_v3  ;;  %v5262_v7 = vpop.f32.mrb[1].mxu1  ;;  %v5264_v9 = vpop.f32.mrb[3].mxu0 }
 0x275   :  { %v476_v10 = vadd.f32 1.0, %v5260_v6 }
 0x276   :  { %v370_v12 = vpop.f32.mrb[2].mxu1  ;;  %v5267_v13 = vpop.f32.mrb[4].mxu0 }
 0x277   :  { %v5269_v14 = vadd.f32 %v370_v12, %v274_v3  ;;  %v5271_v15 = vpop.f32.mrb[3].mxu1  ;;  %v5273_v16 = vpop.f32.mrb[5].mxu0  ;;  %480 = vrot.lane.b32.xlu0 %v476_v10, %s5133_s2 }
 0x279   :  { %v477_v17 = vadd.f32 1.0, %v5269_v14 }
 0x27b   :  { %482 = vrot.lane.b32.xlu1 %v477_v17, %s5133_s2 }
 0x2e9   :  { %v481_v23 = vpop.permute.xlu0 %480 }
 0x2ea   :  { %v486_v24 = vmul.f32 %v481_v23, %v475_v22 }
 0x2ec   :  { %v488_v25 = vadd.f32 %v486_v24, %v5260_v6 }
 0x2ed   :  { %v483_v26 = vpop.permute.xlu1 %482 }
 0x2ee   :  { %v487_v27 = vmul.f32 %v483_v26, %v475_v22  ;;  %4583 = vmatprep.mubr.msk.f32.mxu0 %vm291_vm2, %v488_v25 }
 0x2f0   :  { %v489_v28 = vadd.f32 %v487_v27, %v5269_v14 }
 0x2f2   :  { %4584 = vmatmul.mubr.msk.f32.vlgmr.msra.gmra.mrb[6].mxu0 %vm291_vm2, %v489_v28 }
 0x2f3   :  { %4593 = vmatprep.mubr.msk.f32.mxu0 %vm5134_vm6, %v5132_v1 }
 0x3c5   :  { %v4585_v30 = vpop.f32.mrb[6].mxu0 }
 0x3c6   :  { %v5289_v31 = vadd.f32 %v4585_v30, %v4358_v29  ;;  %v573_v32 = vpop.f32.mrb[7].mxu0 }
 0x3c7   :  { %v5291_v33 = vadd.f32 %v4358_v29, %v573_v32 }
 0x3c8   :  { %586 = vrot.lane.b32.xlu0 %v5289_v31, %s5135_s15 }
 0x3c9   :  { %592 = vrot.lane.b32.xlu1 %v5291_v33, %s5136_s16 }
 0x3cc   :  { %584 = vrot.lane.b32.xlu0 %v5291_v33, %s5135_s15 }
 0x3cd   :  { %596 = vrot.lane.b32.xlu1 %v5291_v33, %s5133_s2 }
 0x3d0   :  { %588 = vrot.lane.b32.xlu0 %v5291_v33, %s5137_s17 }
 0x3d4   :  { %590 = vrot.lane.b32.xlu0 %v5289_v31, %s5137_s17 }
 0x3d8   :  { %594 = vrot.lane.b32.xlu0 %v5289_v31, %s5136_s16 }
 0x3dc   :  { %672 = vrot.lane.b32.xlu0 %v5289_v31, %s5133_s2 }
 0x43a   :  { %v5309_v34 = vpop.permute.xlu0 %586 }
 0x43b   :  { %v5311_v35 = vpop.permute.xlu1 %592  ;;  %824 = vrot.lane.b32.xlu0 %v5309_v34, %s5133_s2 }
 0x43e   :  { %v5315_v36 = vpop.permute.xlu0 %584 }
 0x43f   :  { %v597_v37 = vpop.permute.xlu1 %596  ;;  %748 = vrot.lane.b32.xlu1 %v5315_v36, %s5133_s2 }
 0x440   :  { %4587 = vmatpush3.xpose.msk.msra.mxu1 %vm157_vm3, %v597_v37 }
 0x441   :  { %4596 = vmatprep.subr.mxu1 %v5132_v1 }
 0x442   :  { %v5321_v38 = vpop.permute.xlu0 %588 }
 0x443   :  { %4589 = vmatmul.mubr.msk.f32.vlgmr.msra.gmra.mrb[4].mxu1 %vm157_vm3, %v5291_v33  ;;  %900 = vrot.lane.b32.xlu1 %v5321_v38, %s5133_s2 }
 0x444   :  { %4598 = vmatprep.mubr.msk.f32.mxu1 %vm5134_vm6, %v5132_v1 }
 0x446   :  { %v5329_v39 = vpop.permute.xlu0 %590 }
 0x447   :  { %1052 = vrot.lane.b32.xlu1 %v5311_v35, %s5133_s2  ;;  %976 = vrot.lane.b32.xlu0 %v5329_v39, %s5133_s2 }
 0x44a   :  { %v5335_v40 = vpop.permute.xlu0 %594 }
 0x44b   :  { %1128 = vrot.lane.b32.xlu0 %v5335_v40, %s5133_s2 }
 0x44e   :  { %v673_v41 = vpop.permute.xlu0 %672 }
 0x44f   :  { %4592 = vmatpush3.xpose.msk.msra.mxu0 %vm157_vm3, %v673_v41 }
 0x450   :  { %4601 = vmatprep.subr.mxu0 %v5132_v1 }
 0x452   :  { %4594 = vmatmul.mubr.msk.f32.vlgmr.msra.gmra.mrb[8].mxu0 %vm157_vm3, %v5289_v31 }
 0x453   :  { %4603 = vmatprep.mubr.msk.f32.mxu0 %vm5134_vm6, %v5132_v1 }
 0x4ad   :  { %v825_v42 = vpop.permute.xlu0 %824 }
 0x4ae   :  { %4602 = vmatpush3.xpose.msk.msra.mxu0 %vm157_vm3, %v825_v42 }
 0x4af   :  { %4611 = vmatprep.subr.mxu0 %v5132_v1 }
 0x4b1   :  { %v749_v43 = vpop.permute.xlu1 %748  ;;  %4604 = vmatmul.mubr.msk.f32.vlgmr.msra.gmra.mrb[10].mxu0 %vm157_vm3, %v5309_v34 }
 0x4b2   :  { %4597 = vmatpush3.xpose.msk.msra.mxu1 %vm157_vm3, %v749_v43  ;;  %4613 = vmatprep.mubr.msk.f32.mxu0 %vm5134_vm6, %v5132_v1 }
 0x4b3   :  { %4606 = vmatprep.subr.mxu1 %v5132_v1 }
 0x4b5   :  { %4599 = vmatmul.mubr.msk.f32.vlgmr.msra.gmra.mrb[6].mxu1 %vm157_vm3, %v5315_v36  ;;  %v901_v44 = vpop.permute.xlu1 %900 }
 0x4b6   :  { %4607 = vmatpush3.xpose.msk.msra.mxu1 %vm157_vm3, %v901_v44  ;;  %4608 = vmatprep.mubr.msk.f32.mxu1 %vm5134_vm6, %v5132_v1 }
 0x4b7   :  { %4616 = vmatprep.subr.mxu1 %v5132_v1 }
 0x4b9   :  { %4609 = vmatmul.mubr.msk.f32.vlgmr.msra.gmra.mrb[8].mxu1 %vm157_vm3, %v5321_v38  ;;  %v1053_v45 = vpop.permute.xlu1 %1052  ;;  %v977_v46 = vpop.permute.xlu0 %976 }
 0x4ba   :  { %4612 = vmatpush3.xpose.msk.msra.mxu0 %vm157_vm3, %v977_v46  ;;  %4617 = vmatpush3.xpose.msk.msra.mxu1 %vm157_vm3, %v1053_v45 }
 0x4bb   :  { %4618 = vmatprep.mubr.msk.f32.mxu1 %vm5134_vm6, %v5132_v1  ;;  %4621 = vmatprep.subr.mxu0 %v5132_v1 }
 0x4bc   :  { %4626 = vmatprep.subr.mxu1 %v5132_v1 }
 0x4bd   :  { %4614 = vmatmul.mubr.msk.f32.vlgmr.msra.gmra.mrb[12].mxu0 %vm157_vm3, %v5329_v39  ;;  %4619 = vmatmul.mubr.msk.f32.vlgmr.msra.gmra.mrb[10].mxu1 %vm157_vm3, %v5311_v35  ;;  %v1129_v47 = vpop.permute.xlu0 %1128 }
 0x4be   :  { %4622 = vmatpush3.xpose.msk.msra.mxu0 %vm157_vm3, %v1129_v47  ;;  %4623 = vmatprep.mubr.msk.f32.mxu0 %vm5134_vm6, %v5132_v1 }
 0x4bf   :  { %4631 = vmatprep.subr.mxu0 %v5132_v1  ;;  %4628 = vmatprep.mubr.msk.f32.mxu1 %vm5134_vm6, %v5132_v1 }
 0x4c1   :  { %4624 = vmatmul.mubr.msk.f32.vlgmr.msra.gmra.mrb[14].mxu0 %vm157_vm3, %v5335_v40 }
 0x4c2   :  { %4633 = vmatprep.mubr.msk.f32.mxu0 %vm5134_vm6, %v5132_v1 }
 0x516   :  { %v668_v49 = vpop.f32.mrb[4].mxu1 }
 0x517   :  { %v1204_v50 = vmul.f32 0.35355338, %v668_v49  ;;  %v4590_v51 = vpop.f32.mrb[5].mxu1 }
 0x519   :  { %v1214_v52 = vsel %vm5383_vm7, %v1204_v50, -1e+30 }
 0x51a   :  { %v1222_v53 = vsel %vm157_vm3, %v1214_v52, -inf }
 0x51b   :  { %1223 = vmax.xlane.f32.xlu1 %v1222_v53 }
 0x525   :  { %v744_v54 = vpop.f32.mrb[8].mxu0 }
 0x526   :  { %v1205_v55 = vmul.f32 0.35355338, %v744_v54  ;;  %v4595_v56 = vpop.f32.mrb[9].mxu0 }
 0x528   :  { %v1215_v58 = vsel %vm5383_vm7, %v1205_v55, -1e+30 }
 0x529   :  { %v1225_v11 = vsel %vm157_vm3, %v1215_v58, -inf }
 0x52a   :  { %1226 = vmax.xlane.f32.xlu0 %v1225_v11 }
 0x584   :  { %v896_v59 = vpop.f32.mrb[10].mxu0 }
 0x585   :  { %v1207_v60 = vmul.f32 0.35355338, %v896_v59  ;;  %v4605_v61 = vpop.f32.mrb[11].mxu0 }
 0x587   :  { %v1217_v62 = vsel %vm5383_vm7, %v1207_v60, -1e+30 }
 0x588   :  { %v820_v63 = vpop.f32.mrb[6].mxu1  ;;  %v1231_v2 = vsel %vm157_vm3, %v1217_v62, -inf }
 0x589   :  { %v1206_v3 = vmul.f32 0.35355338, %v820_v63  ;;  %v4600_v4 = vpop.f32.mrb[7].mxu1  ;;  %1232 = vmax.xlane.f32.xlu1 %v1231_v2 }
 0x58b   :  { %v1216_v10 = vsel %vm5383_vm7, %v1206_v3, -1e+30 }
 0x58c   :  { %v972_v12 = vpop.f32.mrb[8].mxu1  ;;  %v1228_v17 = vsel %vm157_vm3, %v1216_v10, -inf }
 0x58d   :  { %v1208_v18 = vmul.f32 0.35355338, %v972_v12  ;;  %v4610_v19 = vpop.f32.mrb[9].mxu1  ;;  %1229 = vmax.xlane.f32.xlu0 %v1228_v17 }
 0x58f   :  { %v1218_v20 = vsel %vm5383_vm7, %v1208_v18, -1e+30 }
 0x590   :  { %v1048_v21 = vpop.f32.mrb[12].mxu0  ;;  %v1124_v22 = vpop.f32.mrb[10].mxu1  ;;  %v1234_v23 = vsel %vm157_vm3, %v1218_v20, -inf }
 0x591   :  { %v1209_v24 = vmul.f32 0.35355338, %v1048_v21  ;;  %v1210_v25 = vmul.f32 0.35355338, %v1124_v22  ;;  %v4620_v26 = vpop.f32.mrb[11].mxu1  ;;  %1235 = vmax.xlane.f32.xlu0 %v1234_v23  ;;  %v4615_v27 = vpop.f32.mrb[13].mxu0 }
 0x593   :  { %v1220_v28 = vsel %vm5383_vm7, %v1210_v25, -1e+30  ;;  %v1219_v29 = vsel %vm5383_vm7, %v1209_v24, -1e+30 }
 0x594   :  { %v1200_v30 = vpop.f32.mrb[14].mxu0  ;;  %v1240_v32 = vsel %vm157_vm3, %v1220_v28, -inf  ;;  %v1237_v37 = vsel %vm157_vm3, %v1219_v29, -inf }
 0x595   :  { %v1211_v41 = vmul.f32 0.35355338, %v1200_v30  ;;  %1241 = vmax.xlane.f32.xlu0 %v1240_v32  ;;  %1238 = vmax.xlane.f32.xlu1 %v1237_v37  ;;  %v4625_v42 = vpop.f32.mrb[15].mxu0 }
 0x597   :  { %v1221_v43 = vsel %vm5383_vm7, %v1211_v41, -1e+30 }
 0x598   :  { %v1243_v44 = vsel %vm157_vm3, %v1221_v43, -inf }
 0x599   :  { %1244 = vmax.xlane.f32.xlu1 %v1243_v44 }
 0x5a8   :  { %v1224_v45 = vpop.xlane.xlu1 %1223 }
 0x5a9   :  { %v1246_v46 = vsub.f32 %v1214_v52, %v1224_v45 }
 0x5aa   :  { %1386 = vrot.lane.b32.xlu1 %v5289_v31, %s5138_s18 }
 0x5ab   :  { %1310 = vrot.lane.b32.xlu0 %v5291_v33, %s5138_s18  ;;  %v1254_v49 = vmul.f32 1.442695, %v1246_v46 }
 0x5ad   :  { %4984 = vpow2.f32 %v1254_v49 }
 0x5ae   :  { %1462 = vrot.lane.b32.xlu1 %v5315_v36, %s5138_s18 }
 0x5af   :  { %1538 = vrot.lane.b32.xlu0 %v5309_v34, %s5138_s18 }
 0x5b2   :  { %1614 = vrot.lane.b32.xlu1 %v5321_v38, %s5138_s18 }
 0x5b3   :  { %1690 = vrot.lane.b32.xlu0 %v5329_v39, %s5138_s18 }
 0x5b7   :  { %v1227_v47 = vpop.xlane.xlu0 %1226  ;;  %v5423_v33 = vpop.eup %4984 }
 0x5b8   :  { %v1247_v31 = vsub.f32 %v1215_v58, %v1227_v47  ;;  %v1270_v36 = vsel %vm157_vm3, %v5423_v33, 0.0 }
 0x5ba   :  { %v1256_v50 = vmul.f32 1.442695, %v1247_v31 }
 0x5bc   :  { %4986 = vpow2.f32 %v1256_v50 }
 0x5c6   :  { %v5427_v34 = vpop.eup %4986 }
 0x5c7   :  { %v1273_v38 = vsel %vm157_vm3, %v5427_v34, 0.0 }
 0x5d2   :  { %1271 = vadd.xlane.f32.xlu0 %v1270_v36 }
 0x5d6   :  { %1274 = vadd.xlane.f32.xlu1 %v1273_v38 }
 0x616   :  { %v1233_v39 = vpop.xlane.xlu1 %1232 }
 0x617   :  { %v1249_v51 = vsub.f32 %v1217_v62, %v1233_v39 }
 0x619   :  { %v1260_v52 = vmul.f32 1.442695, %v1249_v51 }
 0x61a   :  { %v1230_v53 = vpop.xlane.xlu0 %1229 }
 0x61b   :  { %4988 = vpow2.f32 %v1260_v52  ;;  %v1248_v54 = vsub.f32 %v1216_v10, %v1230_v53 }
 0x61d   :  { %v1258_v55 = vmul.f32 1.442695, %v1248_v54 }
 0x61e   :  { %v1236_v56 = vpop.xlane.xlu0 %1235 }
 0x61f   :  { %4990 = vpow2.f32 %v1258_v55  ;;  %v1250_v58 = vsub.f32 %v1218_v20, %v1236_v56 }
 0x621   :  { %v1262_v11 = vmul.f32 1.442695, %v1250_v58 }
 0x622   :  { %v1239_v59 = vpop.xlane.xlu1 %1238  ;;  %v1242_v60 = vpop.xlane.xlu0 %1241 }
 0x623   :  { %4992 = vpow2.f32 %v1262_v11  ;;  %v1251_v61 = vsub.f32 %v1219_v29, %v1239_v59  ;;  %v1252_v63 = vsub.f32 %v1220_v28, %v1242_v60 }
 0x625   :  { %v4989_v2 = vpop.eup %4988  ;;  %v1264_v3 = vmul.f32 1.442695, %v1251_v61  ;;  %v1266_v4 = vmul.f32 1.442695, %v1252_v63 }
 0x626   :  { %v1245_v12 = vpop.xlane.xlu1 %1244  ;;  %v1311_v17 = vpop.permute.xlu0 %1310  ;;  %v1279_v62 = vsel %vm157_vm3, %v4989_v2, 0.0 }
 0x627   :  { %4994 = vpow2.f32 %v1264_v3  ;;  %v1253_v18 = vsub.f32 %v1221_v43, %v1245_v12  ;;  %1280 = vadd.xlane.f32.xlu1 %v1279_v62  ;;  %4627 = vmatpush3.msra.mxu1 %v1311_v17  ;;  %v1951_v12 = vld [vmem:[#allocation2 + $0x80] sm:$0xff]  ;;  %v1952_v62 = vld [vmem:[#allocation2 + $0xd8] sm:$0xff] }
 0x628   :  { %4996 = vpow2.f32 %v1266_v4  ;;  %4636 = vmatprep.subr.mxu1 %v5132_v1  ;;  %v1950_v4 = vld [vmem:[#allocation2 + $0x28] sm:$0xff] }
 0x629   :  { %v4991_v10 = vpop.eup %4990  ;;  %v1268_v19 = vmul.f32 1.442695, %v1253_v18  ;;  %v4874_v17 = vpack.c.bf16 %v1951_v12, %v1950_v4  ;;  %v1953_v18 = vld [vmem:[#allocation2 + $0x130] sm:$0xff] }
 0x62a   :  { %v1387_v20 = vpop.permute.xlu1 %1386  ;;  %v1276_v21 = vsel %vm157_vm3, %v4991_v10, 0.0  ;;  %v1539_v30 = vpop.permute.xlu0 %1538 }
 0x62b   :  { %4998 = vpow2.f32 %v1268_v19  ;;  %4632 = vmatpush3.msra.mxu0 %v1387_v20  ;;  %1277 = vadd.xlane.f32.xlu0 %v1276_v21  ;;  %v4878_v19 = vpack.c.bf16 %v1953_v18, %v1952_v62  ;;  %v2102_v62 = vld [vmem:[#allocation2 + $0x30] sm:$0xff]  ;;  %v2103_v18 = vld [vmem:[#allocation2 + $0x88] sm:$0xff] }
 0x62c   :  { %4641 = vmatprep.subr.mxu0 %v5132_v1 }
 0x62d   :  { %v4993_v22 = vpop.eup %4992 }
 0x62e   :  { %v1282_v23 = vsel %vm157_vm3, %v4993_v22, 0.0  ;;  %v1463_v32 = vpop.permute.xlu1 %1462  ;;  %v1691_v37 = vpop.permute.xlu0 %1690 }
 0x62f   :  { %1283 = vadd.xlane.f32.xlu0 %v1282_v23 }
 0x631   :  { %v5436_v24 = vpop.eup %4994 }
 0x632   :  { %v5438_v25 = vpop.eup %4996  ;;  %v1285_v26 = vsel %vm157_vm3, %v5436_v24, 0.0  ;;  %v1615_v41 = vpop.permute.xlu1 %1614 }
 0x633   :  { %1286 = vadd.xlane.f32.xlu1 %v1285_v26  ;;  %v1288_v27 = vsel %vm157_vm3, %v5438_v25, 0.0 }
 0x634   :  { %1289 = vadd.xlane.f32.xlu0 %v1288_v27 }
 0x635   :  { %v5444_v28 = vpop.eup %4998 }
 0x636   :  { %v1291_v29 = vsel %vm157_vm3, %v5444_v28, 0.0 }
 0x637   :  { %1292 = vadd.xlane.f32.xlu1 %v1291_v29 }
 0x648   :  { %1766 = vrot.lane.b32.xlu1 %v5311_v35, %s5138_s18 }
 0x64a   :  { %1842 = vrot.lane.b32.xlu0 %v5335_v40, %s5138_s18 }
 0x65f   :  { %v1272_v42 = vpop.xlane.xlu0 %1271 }
 0x660   :  { %5000 = vrcp.f32 %v1272_v42 }
 0x663   :  { %v1275_v43 = vpop.xlane.xlu1 %1274 }
 0x664   :  { %5002 = vrcp.f32 %v1275_v43 }
 0x66a   :  { %v5001_v44 = vpop.eup %5000 }
 0x66b   :  { %v1295_v45 = vmul.f32 %v5001_v44, %v5423_v33 }
 0x66d   :  { %4629 = vmatmul.mubr.msk.f32.vlgmr.msra.gmra.mrb[12].mxu1 %vm157_vm3, %v1295_v45 }
 0x66e   :  { %v5003_v46 = vpop.eup %5002  ;;  %4637 = vmatpush3.msra.mxu1 %v1463_v32  ;;  %4638 = vmatprep.mubr.msk.f32.mxu1 %vm5134_vm6, %v5132_v1 }
 0x66f   :  { %v1297_v35 = vmul.f32 %v5003_v46, %v5427_v34  ;;  %4646 = vmatprep.subr.mxu1 %v5132_v1 }
 0x671   :  { %4634 = vmatmul.mubr.msk.f32.vlgmr.msra.gmra.mrb[16].mxu0 %vm157_vm3, %v1297_v35 }
 0x672   :  { %4642 = vmatpush3.msra.mxu0 %v1539_v30  ;;  %4643 = vmatprep.mubr.msk.f32.mxu0 %vm5134_vm6, %v5132_v1 }
 0x673   :  { %4651 = vmatprep.subr.mxu0 %v5132_v1 }
 0x6b4   :  { %v1281_v40 = vpop.xlane.xlu1 %1280 }
 0x6b5   :  { %5004 = vrcp.f32 %v1281_v40 }
 0x6b8   :  { %v1278_v47 = vpop.xlane.xlu0 %1277 }
 0x6b9   :  { %5006 = vrcp.f32 %v1278_v47 }
 0x6bc   :  { %v1284_v49 = vpop.xlane.xlu0 %1283 }
 0x6bd   :  { %5008 = vrcp.f32 %v1284_v49 }
 0x6bf   :  { %v5005_v31 = vpop.eup %5004 }
 0x6c0   :  { %v1301_v50 = vmul.f32 %v5005_v31, %v4989_v2  ;;  %v1287_v33 = vpop.xlane.xlu1 %1286  ;;  %v4385_v31 = vld [vmem:[%s5867_s5 + $0x6] ss:$0 sm:$0xff] }
 0x6c1   :  { %5010 = vrcp.f32 %v1287_v33  ;;  %v1290_v36 = vpop.xlane.xlu0 %1289 }
 0x6c2   :  { %5012 = vrcp.f32 %v1290_v36  ;;  %4644 = vmatmul.mubr.msk.f32.vlgmr.msra.gmra.mrb[18].mxu0 %vm157_vm3, %v1301_v50 }
 0x6c3   :  { %v5007_v34 = vpop.eup %5006  ;;  %4652 = vmatpush3.msra.mxu0 %v1691_v37  ;;  %4653 = vmatprep.mubr.msk.f32.mxu0 %vm5134_vm6, %v5132_v1 }
 0x6c4   :  { %v1299_v38 = vmul.f32 %v5007_v34, %v4991_v10  ;;  %v1293_v39 = vpop.xlane.xlu1 %1292  ;;  %4661 = vmatprep.subr.mxu0 %v5132_v1 }
 0x6c5   :  { %5014 = vrcp.f32 %v1293_v39  ;;  %v1843_v11 = vpop.permute.xlu0 %1842 }
 0x6c6   :  { %4639 = vmatmul.mubr.msk.f32.vlgmr.msra.gmra.mrb[14].mxu1 %vm157_vm3, %v1299_v38 }
 0x6c7   :  { %v5009_v51 = vpop.eup %5008  ;;  %4647 = vmatpush3.msra.mxu1 %v1615_v41  ;;  %4648 = vmatprep.mubr.msk.f32.mxu1 %vm5134_vm6, %v5132_v1 }
 0x6c8   :  { %v1303_v52 = vmul.f32 %v5009_v51, %v4993_v22  ;;  %v1767_v53 = vpop.permute.xlu1 %1766  ;;  %4656 = vmatprep.subr.mxu1 %v5132_v1 }
 0x6ca   :  { %4649 = vmatmul.mubr.msk.f32.vlgmr.msra.gmra.mrb[16].mxu1 %vm157_vm3, %v1303_v52 }
 0x6cb   :  { %v5011_v54 = vpop.eup %5010  ;;  %4657 = vmatpush3.msra.mxu1 %v1767_v53  ;;  %4658 = vmatprep.mubr.msk.f32.mxu1 %vm5134_vm6, %v5132_v1 }
 0x6cc   :  { %v5013_v55 = vpop.eup %5012  ;;  %v1305_v56 = vmul.f32 %v5011_v54, %v5436_v24  ;;  %4875 = vmatprep.subr.bf16.mxu1 %v4874_v17 }
 0x6cd   :  { %v1307_v58 = vmul.f32 %v5013_v55, %v5438_v25 }
 0x6ce   :  { %4654 = vmatmul.mubr.msk.f32.vlgmr.msra.gmra.mrb[20].mxu0 %vm157_vm3, %v1305_v56 }
 0x6cf   :  { %v5015_v59 = vpop.eup %5014  ;;  %4659 = vmatmul.mubr.msk.f32.vlgmr.msra.gmra.mrb[18].mxu1 %vm157_vm3, %v1307_v58  ;;  %4662 = vmatpush3.msra.mxu0 %v1843_v11 }
 0x6d0   :  { %v1309_v60 = vmul.f32 %v5015_v59, %v5444_v28  ;;  %4663 = vmatprep.mubr.msk.f32.mxu0 %vm5134_vm6, %v5132_v1  ;;  %4877 = vmatpush3.bf16.msra.mxu1 %v4874_v17 }
 0x6d1   :  { %4879 = vmatprep.subr.bf16.mxu1 %v4878_v19 }
 0x6d2   :  { %4664 = vmatmul.mubr.msk.f32.vlgmr.msra.gmra.mrb[22].mxu0 %vm157_vm3, %v1309_v60 }
 0x6d4   :  { %4881 = vmatpush3.bf16.msra.mxu1 %v4878_v19  ;;  %v2104_v19 = vld [vmem:[#allocation2 + $0xe0] sm:$0xff] }
 0x740   :  { %v1382_v61 = vpop.f32.mrb[12].mxu1 }
 0x741   :  { %v4630_v63 = vpop.f32.mrb[13].mxu1 }
 0x744   :  { %v1458_v2 = vpop.f32.mrb[16].mxu0 }
 0x745   :  { %v4635_v3 = vpop.f32.mrb[17].mxu0 }
 0x795   :  { %v1610_v10 = vpop.f32.mrb[18].mxu0 }
 0x796   :  { %1922 = vrot.lane.b32.xlu0 %v1610_v10, %s5139_s19  ;;  %v4645_v20 = vpop.f32.mrb[19].mxu0  ;;  %v4882_v10 = vpack.c.bf16 %v2103_v18, %v2102_v62 }
 0x797   :  { %v2105_v20 = vld [vmem:[#allocation2 + $0x138] sm:$0xff] }
 0x798   :  { %4883 = vmatprep.subr.bf16.mxu0 %v4882_v10 }
 0x799   :  { %v1534_v21 = vpop.f32.mrb[14].mxu1  ;;  %4885 = vmatpush3.bf16.msra.mxu0 %v4882_v10 }
 0x79a   :  { %1920 = vrot.lane.b32.xlu1 %v1534_v21, %s5139_s19  ;;  %v4640_v22 = vpop.f32.mrb[15].mxu1  ;;  %v4886_v21 = vpack.c.bf16 %v2105_v20, %v2104_v19 }
 0x79c   :  { %4887 = vmatprep.subr.bf16.mxu0 %v4886_v21 }
 0x79d   :  { %v1686_v23 = vpop.f32.mrb[16].mxu1  ;;  %4889 = vmatpush3.bf16.msra.mxu0 %v4886_v21 }
 0x79e   :  { %1928 = vrot.lane.b32.xlu1 %v1686_v23, %s5130_s21  ;;  %v4650_v24 = vpop.f32.mrb[17].mxu1 }
 0x7a1   :  { %v1762_v25 = vpop.f32.mrb[20].mxu0 }
 0x7a2   :  { %v1838_v26 = vpop.f32.mrb[18].mxu1  ;;  %1930 = vrot.lane.b32.xlu0 %v1762_v25, %s5130_s21  ;;  %v4655_v27 = vpop.f32.mrb[21].mxu0 }
 0x7a3   :  { %1936 = vrot.lane.b32.xlu1 %v1838_v26, %s5140_s20  ;;  %v4660_v28 = vpop.f32.mrb[19].mxu1 }
 0x7a5   :  { %v1914_v29 = vpop.f32.mrb[22].mxu0 }
 0x7a6   :  { %1938 = vrot.lane.b32.xlu0 %v1914_v29, %s5140_s20  ;;  %v4665_v30 = vpop.f32.mrb[23].mxu0 }
 0x808   :  { %v1923_v37 = vpop.permute.xlu0 %1922 }
 0x809   :  { %v1943_v35 = vsel %vm157_vm3, %v1458_v2, %v1923_v37 }
 0x80c   :  { %v1921_v32 = vpop.permute.xlu1 %1920 }
 0x80d   :  { %v1942_v42 = vsel %vm157_vm3, %v1382_v61, %v1921_v32 }
 0x810   :  { %v1929_v41 = vpop.permute.xlu1 %1928 }
 0x811   :  { %v1945_v44 = vsel %vm1944_vm8, %v1942_v42, %v1929_v41 }
 0x814   :  { %v1931_v43 = vpop.permute.xlu0 %1930 }
 0x815   :  { %v1937_v45 = vpop.permute.xlu1 %1936  ;;  %v1946_v40 = vsel %vm1944_vm8, %v1943_v35, %v1931_v43 }
 0x816   :  { %v1948_v46 = vsel %vm1947_vm9, %v1945_v44, %v1937_v45 }
 0x817   :  { %4674 = vmatprep.mubr.msk.f32.mxu1 %vm291_vm2, %v1948_v46 }
 0x818   :  { %v1939_v47 = vpop.permute.xlu0 %1938 }
 0x819   :  { %v1949_v49 = vsel %vm1947_vm9, %v1946_v40, %v1939_v47  ;;  %v2213_v40 = vld [vmem:[#allocation4 + $0x10] sm:$0xff] }
 0x81a   :  { %4675 = vmatmul.mubr.msk.f32.vlgmr.msra.gmra.mrb[20].mxu1 %vm291_vm2, %v1949_v49  ;;  %v2214_v49 = vld [vmem:[#allocation4 + $0x20] sm:$0xff] }
 0x8ed   :  { %v4676_v50 = vpop.f32.mrb[20].mxu1 }
 0x8ee   :  { %v2039_v33 = vadd.f32 %v4676_v50, %v4385_v31  ;;  %v2033_v36 = vpop.f32.mrb[21].mxu1 }
 0x8ef   :  { %v2034_v34 = vadd.f32 %v4385_v31, %v2033_v36  ;;  %v2215_v31 = vld [vmem:[#allocation4 + $0x30] sm:$0xff] }
 0x8f0   :  { %2046 = vrot.lane.b32.xlu0 %v2039_v33, %s5138_s18  ;;  %v4894_v50 = vpack.c.bf16 %v2215_v31, %v2214_v49  ;;  %v2216_v33 = vld [vmem:[#allocation4 + $0x40] sm:$0xff]  ;;  %v2217_v36 = vld [vmem:[#allocation4 + $0x50] sm:$0xff] }
 0x8f1   :  { %2044 = vrot.lane.b32.xlu1 %v2034_v34, %s5138_s18  ;;  %v4898_v34 = vpack.c.bf16 %v2217_v36, %v2216_v33  ;;  %v2375_v36 = vld [vmem:[#allocation2 + $0x38] sm:$0xff] }
 0x962   :  { %v2047_v38 = vpop.permute.xlu0 %2046 }
 0x963   :  { %v2051_v39 = vmul.f32 %v2047_v38, %v5269_v14  ;;  %v2045_v51 = vpop.permute.xlu1 %2044  ;;  %v2218_v38 = vld [vmem:[#allocation4 + $0x60] sm:$0xff] }
 0x964   :  { %v2050_v52 = vmul.f32 %v2045_v51, %v5260_v6 }
 0x965   :  { %2056 = vrot.lane.b32.xlu0 %v2051_v39, %s5138_s18  ;;  %v2219_v39 = vld [vmem:[#allocation4 + $0x70] sm:$0xff] }
 0x966   :  { %2054 = vrot.lane.b32.xlu1 %v2050_v52, %s5138_s18  ;;  %v4902_v51 = vpack.c.bf16 %v2219_v39, %v2218_v38  ;;  %v4388_v52 = vld [vmem:[%s5867_s5 + $0x7] ss:$0 sm:$0xff]  ;;  %v2377_v39 = vld [vmem:[#allocation2 + $0xe8] sm:$0xff] }
 0x9d7   :  { %v2057_v53 = vpop.permute.xlu0 %2056 }
 0x9d8   :  { %v5505_v54 = vadd.f32 %v5224_v8, %v2057_v53  ;;  %v2055_v55 = vpop.permute.xlu1 %2054 }
 0x9d9   :  { %v5508_v56 = vadd.f32 %v5224_v8, %v2055_v55 }
 0x9da   :  { %v2065_v58 = vsel %vm291_vm2, %v5505_v54, 0.0 }
 0x9db   :  { %2066 = vadd.xlane.f32.xlu0 %v2065_v58  ;;  %v2062_v11 = vsel %vm291_vm2, %v5508_v56, 0.0 }
 0x9dc   :  { %2063 = vadd.xlane.f32.xlu1 %v2062_v11 }
 0xa68   :  { %v2067_v59 = vpop.xlane.xlu0 %2066 }
 0xa69   :  { %v2069_v60 = vmul.f32 0.03125, %v2067_v59  ;;  %v2064_v61 = vpop.xlane.xlu1 %2063 }
 0xa6a   :  { %v2068_v63 = vmul.f32 0.03125, %v2064_v61 }
 0xa6b   :  { %v2071_v2 = vsub.f32 %v5505_v54, %v2069_v60 }
 0xa6c   :  { %v2070_v3 = vsub.f32 %v5508_v56, %v2068_v63 }
 0xa6d   :  { %v2073_v4 = vmul.f32 %v2071_v2, %v2071_v2 }
 0xa6e   :  { %v2072_v12 = vmul.f32 %v2070_v3, %v2070_v3 }
 0xa6f   :  { %v2077_v8 = vsel %vm291_vm2, %v2073_v4, 0.0 }
 0xa70   :  { %2078 = vadd.xlane.f32.xlu1 %v2077_v8  ;;  %v2074_v17 = vsel %vm291_vm2, %v2072_v12, 0.0 }
 0xa71   :  { %2075 = vadd.xlane.f32.xlu0 %v2074_v17 }
 0xa81   :  { %2096 = vrot.lane.b32.xlu1 %v5269_v14, %s5141_s23  ;;  %v277_v14 = vsub.s32 1, %v5248_v57 }
 0xa87   :  { %2094 = vrot.lane.b32.xlu0 %v5260_v6, %s5141_s23  ;;  %v278_v6 = vrot.slane %v5254_v0, %v277_v14 }
 0xa89   :  { %v5525_v28 = vadd.f32 %v5271_v15, %v278_v6  ;;  %v5528_v29 = vadd.f32 %v5262_v7, %v278_v6  ;;  %v2212_v7 = vld [vmem:[#allocation4] sm:$0xff] }
 0xa8a   :  { %v4890_v47 = vpack.c.bf16 %v2213_v40, %v2212_v7 }
 0xa8b   :  { %v5531_v41 = vadd.f32 1.0, %v5525_v28  ;;  %v5534_v43 = vadd.f32 1.0, %v5528_v29 }
 0xa8c   :  { %4891 = vmatprep.subr.bf16.mxu1 %v4890_v47 }
 0xa8d   :  { %4893 = vmatpush3.bf16.msra.mxu1 %v4890_v47 }
 0xa8e   :  { %4895 = vmatprep.subr.bf16.mxu1 %v4894_v50 }
 0xa91   :  { %4897 = vmatpush3.bf16.msra.mxu1 %v4894_v50 }
 0xa92   :  { %4899 = vmatprep.subr.bf16.mxu1 %v4898_v34 }
 0xa95   :  { %4901 = vmatpush3.bf16.msra.mxu1 %v4898_v34  ;;  %v2376_v34 = vld [vmem:[#allocation2 + $0x90] sm:$0xff] }
 0xa96   :  { %4903 = vmatprep.subr.bf16.mxu1 %v4902_v51  ;;  %v4906_v38 = vpack.c.bf16 %v2376_v34, %v2375_v36 }
 0xa98   :  { %4907 = vmatprep.subr.bf16.mxu0 %v4906_v38 }
 0xa99   :  { %4905 = vmatpush3.bf16.msra.mxu1 %v4902_v51  ;;  %v2378_v51 = vld [vmem:[#allocation2 + $0x140] sm:$0xff] }
 0xa9a   :  { %4728 = vmatprep.subr.mxu1 %v5132_v1 }
 0xafd   :  { %v2079_v22 = vpop.xlane.xlu1 %2078 }
 0xafe   :  { %v2081_v23 = vmul.f32 0.03125, %v2079_v22  ;;  %v2076_v24 = vpop.xlane.xlu0 %2075 }
 0xaff   :  { %v2080_v25 = vmul.f32 0.03125, %v2076_v24  ;;  %v4391_v24 = vld [vmem:[%s5867_s5 + $0x8] ss:$0 sm:$0xff] }
 0xb00   :  { %v2083_v26 = vadd.f32 1e-06, %v2081_v23 }
 0xb01   :  { %v2082_v27 = vadd.f32 1e-06, %v2080_v25  ;;  %v2097_v15 = vpop.permute.xlu1 %2096 }
 0xb02   :  { %5016 = vrsqrt.f32 %v2083_v26  ;;  %v2095_v45 = vpop.permute.xlu0 %2094 }
 0xb03   :  { %5018 = vrsqrt.f32 %v2082_v27 }
 0xb0c   :  { %v5017_v30 = vpop.eup %5016 }
 0xb0d   :  { %v5019_v32 = vpop.eup %5018  ;;  %v2087_v37 = vmul.f32 %v5017_v30, %v2071_v2 }
 0xb0e   :  { %v2086_v42 = vmul.f32 %v5019_v32, %v2070_v3 }
 0xb0f   :  { %v2091_v44 = vmul.f32 %v5531_v41, %v2087_v37 }
 0xb10   :  { %v2090_v0 = vmul.f32 %v5534_v43, %v2086_v42 }
 0xb11   :  { %v2101_v35 = vadd.f32 %v2097_v15, %v2091_v44 }
 0xb12   :  { %v2100_v46 = vadd.f32 %v2095_v45, %v2090_v0 }
 0xb14   :  { %4685 = vmatprep.mubr.msk.f32.mxu0 %vm291_vm2, %v2100_v46 }
 0xb15   :  { %4686 = vmatmul.mubr.msk.f32.vlgmr.msra.gmra.mrb[24].mxu0 %vm291_vm2, %v2101_v35 }
 0xb16   :  { %4909 = vmatpush3.bf16.msra.mxu0 %v4906_v38 }
 0xbe8   :  { %v4687_v53 = vpop.f32.mrb[24].mxu0 }
 0xbe9   :  { %v2191_v55 = vadd.f32 %v4687_v53, %v4388_v52  ;;  %v2185_v58 = vpop.f32.mrb[25].mxu0 }
 0xbea   :  { %v2186_v11 = vadd.f32 %v4388_v52, %v2185_v58  ;;  %v4910_v52 = vpack.c.bf16 %v2378_v51, %v2377_v39 }
 0xbeb   :  { %v2197_v59 = vmul.f32 0.044715, %v2191_v55  ;;  %v2195_v21 = vmul.f32 0.5, %v2191_v55 }
 0xbec   :  { %v2196_v60 = vmul.f32 0.044715, %v2186_v11  ;;  %v2194_v19 = vmul.f32 0.5, %v2186_v11  ;;  %4911 = vmatprep.subr.bf16.mxu0 %v4910_v52 }
 0xbed   :  { %v2199_v61 = vmul.f32 %v2197_v59, %v2191_v55  ;;  %4913 = vmatpush3.bf16.msra.mxu0 %v4910_v52 }
 0xbee   :  { %v2198_v63 = vmul.f32 %v2196_v60, %v2186_v11  ;;  %4718 = vmatprep.subr.mxu0 %v5132_v1 }
 0xbef   :  { %v2201_v2 = vmul.f32 %v2199_v61, %v2191_v55 }
 0xbf0   :  { %v2200_v3 = vmul.f32 %v2198_v63, %v2186_v11 }
 0xbf1   :  { %v2203_v4 = vadd.f32 %v2201_v2, %v2191_v55 }
 0xbf2   :  { %v2202_v12 = vadd.f32 %v2200_v3, %v2186_v11 }
 0xbf3   :  { %v2205_v8 = vmul.f32 0.7978846, %v2203_v4 }
 0xbf4   :  { %v2204_v17 = vmul.f32 0.7978846, %v2202_v12 }
 0xbf5   :  { %5020 = vtanh.f32 %v2205_v8 }
 0xbf6   :  { %5022 = vtanh.f32 %v2204_v17 }
 0xbff   :  { %v5021_v62 = vpop.eup %5020 }
 0xc00   :  { %v5023_v18 = vpop.eup %5022  ;;  %v2209_v10 = vadd.f32 1.0, %v5021_v62  ;;  %v4394_v62 = vld [vmem:[%s5867_s5 + $0x9] ss:$0 sm:$0xff] }
 0xc01   :  { %v2208_v20 = vadd.f32 1.0, %v5023_v18 }
 0xc02   :  { %v2211_v23 = vmul.f32 %v2209_v10, %v2195_v21 }
 0xc03   :  { %v2210_v22 = vmul.f32 %v2208_v20, %v2194_v19 }
 0xc05   :  { %4704 = vmatprep.mubr.msk.f32.mxu1 %vm2227_vm10, %v2210_v22 }
 0xc06   :  { %4705 = vmatmul.mubr.msk.f32.vlgmr.msra.gmra.mrb[22].mxu1 %vm2227_vm10, %v2211_v23 }
 0xc07   :  { %4730 = vmatprep.mubr.msk.f32.mxu1 %vm5134_vm6, %v5132_v1 }
 0xcd9   :  { %v4706_v25 = vpop.f32.mrb[22].mxu1 }
 0xcda   :  { %v2306_v26 = vadd.f32 %v4706_v25, %v4391_v24  ;;  %v2300_v27 = vpop.f32.mrb[23].mxu1 }
 0xcdb   :  { %v2301_v14 = vadd.f32 %v4391_v24, %v2300_v27 }
 0xcdc   :  { %2313 = vrot.lane.b32.xlu0 %v2306_v26, %s5141_s23 }
 0xcdd   :  { %2311 = vrot.lane.b32.xlu1 %v2301_v14, %s5141_s23 }
 0xd4e   :  { %v2314_v6 = vpop.permute.xlu0 %2313 }
 0xd4f   :  { %v2318_v30 = vmul.f32 %v2314_v6, %v5525_v28  ;;  %v2312_v32 = vpop.permute.xlu1 %2311 }
 0xd50   :  { %v2317_v37 = vmul.f32 %v2312_v32, %v5528_v29 }
 0xd51   :  { %2323 = vrot.lane.b32.xlu0 %v2318_v30, %s5133_s2 }
 0xd52   :  { %2321 = vrot.lane.b32.xlu1 %v2317_v37, %s5133_s2 }
 0xdc3   :  { %v2324_v42 = vpop.permute.xlu0 %2323 }
 0xdc4   :  { %v5558_v44 = vadd.f32 %v2324_v42, %v5505_v54  ;;  %v2322_v0 = vpop.permute.xlu1 %2321 }
 0xdc5   :  { %v5561_v45 = vadd.f32 %v2322_v0, %v5508_v56 }
 0xdc6   :  { %v2332_v15 = vsel %vm291_vm2, %v5558_v44, 0.0 }
 0xdc7   :  { %2333 = vadd.xlane.f32.xlu0 %v2332_v15  ;;  %v2329_v46 = vsel %vm291_vm2, %v5561_v45, 0.0 }
 0xdc8   :  { %2330 = vadd.xlane.f32.xlu1 %v2329_v46 }
 0xe54   :  { %v2334_v35 = vpop.xlane.xlu0 %2333 }
 0xe55   :  { %v2336_v7 = vmul.f32 0.03125, %v2334_v35  ;;  %v2331_v40 = vpop.xlane.xlu1 %2330 }
 0xe56   :  { %v2335_v47 = vmul.f32 0.03125, %v2331_v40 }
 0xe57   :  { %v2338_v49 = vsub.f32 %v5558_v44, %v2336_v7 }
 0xe58   :  { %v2337_v54 = vsub.f32 %v5561_v45, %v2335_v47 }
 0xe59   :  { %v2340_v31 = vmul.f32 %v2338_v49, %v2338_v49 }
 0xe5a   :  { %v2339_v50 = vmul.f32 %v2337_v54, %v2337_v54 }
 0xe5b   :  { %v2344_v56 = vsel %vm291_vm2, %v2340_v31, 0.0 }
 0xe5c   :  { %2345 = vadd.xlane.f32.xlu1 %v2344_v56  ;;  %v2341_v33 = vsel %vm291_vm2, %v2339_v50, 0.0 }
 0xe5d   :  { %2342 = vadd.xlane.f32.xlu0 %v2341_v33 }
 0xe6d   :  { %2359 = vrot.lane.b32.xlu1 %v5531_v41, %s5141_s23 }
 0xe71   :  { %2367 = vrot.lane.b32.xlu1 %v5528_v29, %s5138_s18 }
 0xe73   :  { %2357 = vrot.lane.b32.xlu0 %v5534_v43, %s5141_s23 }
 0xe77   :  { %2369 = vrot.lane.b32.xlu0 %v5525_v28, %s5138_s18 }
 0xee9   :  { %v2346_v41 = vpop.xlane.xlu1 %2345 }
 0xeea   :  { %v2348_v29 = vmul.f32 0.03125, %v2346_v41  ;;  %v2343_v53 = vpop.xlane.xlu0 %2342 }
 0xeeb   :  { %v2347_v55 = vmul.f32 0.03125, %v2343_v53 }
 0xeec   :  { %v2350_v43 = vadd.f32 1e-06, %v2348_v29 }
 0xeed   :  { %v2349_v58 = vadd.f32 1e-06, %v2347_v55  ;;  %v2360_v28 = vpop.permute.xlu1 %2359 }
 0xeee   :  { %5024 = vrsqrt.f32 %v2350_v43  ;;  %v2358_v59 = vpop.permute.xlu0 %2357 }
 0xeef   :  { %5026 = vrsqrt.f32 %v2349_v58 }
 0xef1   :  { %v2368_v4 = vpop.permute.xlu1 %2367 }
 0xef2   :  { %v2370_v8 = vpop.permute.xlu0 %2369 }
 0xef8   :  { %v5025_v11 = vpop.eup %5024 }
 0xef9   :  { %v5027_v60 = vpop.eup %5026  ;;  %v2354_v61 = vmul.f32 %v5025_v11, %v2338_v49 }
 0xefa   :  { %v2353_v63 = vmul.f32 %v5027_v60, %v2337_v54 }
 0xefb   :  { %v2364_v2 = vmul.f32 %v2360_v28, %v2354_v61 }
 0xefc   :  { %v2363_v3 = vmul.f32 %v2358_v59, %v2353_v63 }
 0xefd   :  { %v2374_v17 = vadd.f32 %v2370_v8, %v2364_v2 }
 0xefe   :  { %v2373_v12 = vadd.f32 %v2368_v4, %v2363_v3 }
 0xf00   :  { %4715 = vmatprep.mubr.msk.f32.mxu0 %vm291_vm2, %v2373_v12 }
 0xf01   :  { %4716 = vmatmul.mubr.msk.f32.vlgmr.msra.gmra.mrb[26].mxu0 %vm291_vm2, %v2374_v17 }
 0xf02   :  { %4720 = vmatprep.mubr.msk.f32.mxu0 %vm5134_vm6, %v5132_v1 }
 0xfd4   :  { %v4717_v18 = vpop.f32.mrb[26].mxu0 }
 0xfd5   :  { %v5587_v10 = vadd.f32 %v4717_v18, %v4394_v62  ;;  %v2458_v19 = vpop.f32.mrb[27].mxu0 }
 0xfd6   :  { %v5589_v20 = vadd.f32 %v4394_v62, %v2458_v19 }
 0xfd7   :  { %2471 = vrot.lane.b32.xlu0 %v5587_v10, %s5135_s15 }
 0xfd8   :  { %2469 = vrot.lane.b32.xlu1 %v5589_v20, %s5135_s15 }
 0xfdb   :  { %2475 = vrot.lane.b32.xlu0 %v5587_v10, %s5137_s17 }
 0xfdc   :  { %2473 = vrot.lane.b32.xlu1 %v5589_v20, %s5137_s17 }
 0xfdf   :  { %2479 = vrot.lane.b32.xlu0 %v5587_v10, %s5136_s16 }
 0xfe0   :  { %2477 = vrot.lane.b32.xlu1 %v5589_v20, %s5136_s16 }
 0xfe3   :  { %2557 = vrot.lane.b32.xlu0 %v5587_v10, %s5133_s2 }
 0xfe4   :  { %2481 = vrot.lane.b32.xlu1 %v5589_v20, %s5133_s2 }
0x1049   :  { %v5607_v21 = vpop.permute.xlu0 %2471 }
0x104a   :  { %2709 = vrot.lane.b32.xlu0 %v5607_v21, %s5133_s2  ;;  %v5611_v22 = vpop.permute.xlu1 %2469 }
0x104b   :  { %2633 = vrot.lane.b32.xlu1 %v5611_v22, %s5133_s2 }
0x104d   :  { %v5615_v23 = vpop.permute.xlu0 %2475 }
0x104e   :  { %2861 = vrot.lane.b32.xlu0 %v5615_v23, %s5133_s2  ;;  %v5619_v24 = vpop.permute.xlu1 %2473 }
0x104f   :  { %2785 = vrot.lane.b32.xlu1 %v5619_v24, %s5133_s2 }
0x1051   :  { %v5623_v25 = vpop.permute.xlu0 %2479 }
0x1052   :  { %3013 = vrot.lane.b32.xlu0 %v5623_v25, %s5133_s2  ;;  %v5627_v26 = vpop.permute.xlu1 %2477 }
0x1053   :  { %2937 = vrot.lane.b32.xlu1 %v5627_v26, %s5133_s2 }
0x1055   :  { %v2558_v14 = vpop.permute.xlu0 %2557 }
0x1056   :  { %v2482_v27 = vpop.permute.xlu1 %2481 }
0x1057   :  { %4719 = vmatpush3.xpose.msk.msra.mxu0 %vm157_vm3, %v2482_v27 }
0x1058   :  { %4723 = vmatprep.subr.mxu0 %v5132_v1 }
0x105a   :  { %4721 = vmatmul.mubr.msk.f32.vlgmr.msra.gmra.mrb[28].mxu0 %vm157_vm3, %v5589_v20 }
0x105b   :  { %4724 = vmatpush3.xpose.msk.msra.mxu0 %vm157_vm3, %v2558_v14  ;;  %4725 = vmatprep.mubr.msk.f32.mxu0 %vm5134_vm6, %v5132_v1 }
0x105c   :  { %4733 = vmatprep.subr.mxu0 %v5132_v1 }
0x105e   :  { %4726 = vmatmul.mubr.msk.f32.vlgmr.msra.gmra.mrb[30].mxu0 %vm157_vm3, %v5587_v10 }
0x105f   :  { %4735 = vmatprep.mubr.msk.f32.mxu0 %vm5134_vm6, %v5132_v1 }
0x10bc   :  { %v2710_v6 = vpop.permute.xlu0 %2709 }
0x10bd   :  { %4734 = vmatpush3.xpose.msk.msra.mxu0 %vm157_vm3, %v2710_v6  ;;  %v2634_v30 = vpop.permute.xlu1 %2633 }
0x10be   :  { %4729 = vmatpush3.xpose.msk.msra.mxu1 %vm157_vm3, %v2634_v30  ;;  %4743 = vmatprep.subr.mxu0 %v5132_v1 }
0x10bf   :  { %4738 = vmatprep.subr.mxu1 %v5132_v1 }
0x10c0   :  { %v2862_v32 = vpop.permute.xlu0 %2861  ;;  %4736 = vmatmul.mubr.msk.f32.vlgmr.msra.gmra.mrb[32].mxu0 %vm157_vm3, %v5607_v21 }
0x10c1   :  { %4731 = vmatmul.mubr.msk.f32.vlgmr.msra.gmra.mrb[24].mxu1 %vm157_vm3, %v5611_v22  ;;  %4744 = vmatpush3.xpose.msk.msra.mxu0 %vm157_vm3, %v2862_v32  ;;  %v2786_v37 = vpop.permute.xlu1 %2785 }
0x10c2   :  { %4739 = vmatpush3.xpose.msk.msra.mxu1 %vm157_vm3, %v2786_v37  ;;  %4745 = vmatprep.mubr.msk.f32.mxu0 %vm5134_vm6, %v5132_v1 }
0x10c3   :  { %4740 = vmatprep.mubr.msk.f32.mxu1 %vm5134_vm6, %v5132_v1  ;;  %4753 = vmatprep.subr.mxu0 %v5132_v1 }
0x10c4   :  { %v3014_v42 = vpop.permute.xlu0 %3013  ;;  %4746 = vmatmul.mubr.msk.f32.vlgmr.msra.gmra.mrb[34].mxu0 %vm157_vm3, %v5615_v23  ;;  %4748 = vmatprep.subr.mxu1 %v5132_v1 }
0x10c5   :  { %4741 = vmatmul.mubr.msk.f32.vlgmr.msra.gmra.mrb[26].mxu1 %vm157_vm3, %v5619_v24  ;;  %4754 = vmatpush3.xpose.msk.msra.mxu0 %vm157_vm3, %v3014_v42  ;;  %v2938_v0 = vpop.permute.xlu1 %2937 }
0x10c6   :  { %4749 = vmatpush3.xpose.msk.msra.mxu1 %vm157_vm3, %v2938_v0  ;;  %4755 = vmatprep.mubr.msk.f32.mxu0 %vm5134_vm6, %v5132_v1 }
0x10c7   :  { %4750 = vmatprep.mubr.msk.f32.mxu1 %vm5134_vm6, %v5132_v1  ;;  %4763 = vmatprep.subr.mxu0 %v5132_v1 }
0x10c8   :  { %4756 = vmatmul.mubr.msk.f32.vlgmr.msra.gmra.mrb[36].mxu0 %vm157_vm3, %v5623_v25  ;;  %4758 = vmatprep.subr.mxu1 %v5132_v1 }
0x10c9   :  { %4751 = vmatmul.mubr.msk.f32.vlgmr.msra.gmra.mrb[28].mxu1 %vm157_vm3, %v5627_v26  ;;  %4765 = vmatprep.mubr.msk.f32.mxu0 %vm5134_vm6, %v5132_v1 }
0x10ca   :  { %4760 = vmatprep.mubr.msk.f32.mxu1 %vm5134_vm6, %v5132_v1 }
0x112d   :  { %v2553_v15 = vpop.f32.mrb[28].mxu0 }
0x112e   :  { %v3089_v46 = vmul.f32 0.35355338, %v2553_v15  ;;  %v4722_v35 = vpop.f32.mrb[29].mxu0 }
0x1130   :  { %v3097_v7 = vsel %vm5383_vm7, %v3089_v46, -1e+30 }
0x1131   :  { %v2629_v40 = vpop.f32.mrb[30].mxu0  ;;  %v3105_v47 = vsel %vm157_vm3, %v3097_v7, -inf }
0x1132   :  { %v3090_v49 = vmul.f32 0.35355338, %v2629_v40  ;;  %3106 = vmax.xlane.f32.xlu1 %v3105_v47  ;;  %v4727_v54 = vpop.f32.mrb[31].mxu0 }
0x1134   :  { %v3098_v31 = vsel %vm5383_vm7, %v3090_v49, -1e+30 }
0x1135   :  { %v3108_v50 = vsel %vm157_vm3, %v3098_v31, -inf }
0x1136   :  { %3109 = vmax.xlane.f32.xlu0 %v3108_v50 }
0x1193   :  { %v2781_v56 = vpop.f32.mrb[32].mxu0 }
0x1194   :  { %v3092_v33 = vmul.f32 0.35355338, %v2781_v56  ;;  %v2705_v36 = vpop.f32.mrb[24].mxu1  ;;  %v4737_v34 = vpop.f32.mrb[33].mxu0 }
0x1195   :  { %v3091_v38 = vmul.f32 0.35355338, %v2705_v36  ;;  %v4732_v39 = vpop.f32.mrb[25].mxu1 }
0x1196   :  { %v3100_v51 = vsel %vm5383_vm7, %v3092_v33, -1e+30 }
0x1197   :  { %v2933_v52 = vpop.f32.mrb[34].mxu0  ;;  %v3114_v41 = vsel %vm157_vm3, %v3100_v51, -inf  ;;  %v3099_v29 = vsel %vm5383_vm7, %v3091_v38, -1e+30 }
0x1198   :  { %v3094_v53 = vmul.f32 0.35355338, %v2933_v52  ;;  %3115 = vmax.xlane.f32.xlu1 %v3114_v41  ;;  %v2857_v55 = vpop.f32.mrb[26].mxu1  ;;  %v4747_v43 = vpop.f32.mrb[35].mxu0  ;;  %v3111_v58 = vsel %vm157_vm3, %v3099_v29, -inf }
0x1199   :  { %v3093_v28 = vmul.f32 0.35355338, %v2857_v55  ;;  %3112 = vmax.xlane.f32.xlu0 %v3111_v58  ;;  %v4742_v11 = vpop.f32.mrb[27].mxu1 }
0x119a   :  { %v3102_v59 = vsel %vm5383_vm7, %v3094_v53, -1e+30 }
0x119b   :  { %v3085_v60 = vpop.f32.mrb[36].mxu0  ;;  %v3120_v61 = vsel %vm157_vm3, %v3102_v59, -inf  ;;  %v3101_v63 = vsel %vm5383_vm7, %v3093_v28, -1e+30 }
0x119c   :  { %v3096_v2 = vmul.f32 0.35355338, %v3085_v60  ;;  %3121 = vmax.xlane.f32.xlu1 %v3120_v61  ;;  %v3009_v3 = vpop.f32.mrb[28].mxu1  ;;  %v4757_v4 = vpop.f32.mrb[37].mxu0  ;;  %v3117_v12 = vsel %vm157_vm3, %v3101_v63, -inf }
0x119d   :  { %v3095_v8 = vmul.f32 0.35355338, %v3009_v3  ;;  %3118 = vmax.xlane.f32.xlu0 %v3117_v12  ;;  %v4752_v17 = vpop.f32.mrb[29].mxu1 }
0x119e   :  { %v3104_v62 = vsel %vm5383_vm7, %v3096_v2, -1e+30 }
0x119f   :  { %v3126_v18 = vsel %vm157_vm3, %v3104_v62, -inf  ;;  %v3103_v19 = vsel %vm5383_vm7, %v3095_v8, -1e+30 }
0x11a0   :  { %3127 = vmax.xlane.f32.xlu1 %v3126_v18  ;;  %v3123_v27 = vsel %vm157_vm3, %v3103_v19, -inf }
0x11a1   :  { %3124 = vmax.xlane.f32.xlu0 %v3123_v27 }
0x11b1   :  { %3269 = vrot.lane.b32.xlu1 %v5587_v10, %s5138_s18 }
0x11b5   :  { %3345 = vrot.lane.b32.xlu1 %v5611_v22, %s5138_s18 }
0x11b7   :  { %3193 = vrot.lane.b32.xlu0 %v5589_v20, %s5138_s18 }
0x11b9   :  { %3497 = vrot.lane.b32.xlu1 %v5619_v24, %s5138_s18 }
0x11bb   :  { %3421 = vrot.lane.b32.xlu0 %v5607_v21, %s5138_s18 }
0x11bf   :  { %3573 = vrot.lane.b32.xlu0 %v5615_v23, %s5138_s18  ;;  %v3107_v14 = vpop.xlane.xlu1 %3106 }
0x11c0   :  { %v3129_v30 = vsub.f32 %v3097_v7, %v3107_v14 }
0x11c2   :  { %v3137_v32 = vmul.f32 1.442695, %v3129_v30 }
0x11c3   :  { %v3110_v48 = vpop.xlane.xlu0 %3109 }
0x11c4   :  { %v3130_v6 = vsub.f32 %v3098_v31, %v3110_v48 }
0x11c6   :  { %v3139_v10 = vmul.f32 1.442695, %v3130_v6 }
0x11c8   :  { %5028 = vpow2.f32 %v3139_v10 }
0x11c9   :  { %5030 = vpow2.f32 %v3137_v32 }
0x11d2   :  { %v5715_v22 = vpop.eup %5028 }
0x11d3   :  { %v5717_v20 = vpop.eup %5030  ;;  %v3156_v24 = vsel %vm157_vm3, %v5715_v22, 0.0 }
0x11d4   :  { %v3153_v21 = vsel %vm157_vm3, %v5717_v20, 0.0 }
0x11dd   :  { %3157 = vadd.xlane.f32.xlu1 %v3156_v24 }
0x11de   :  { %3154 = vadd.xlane.f32.xlu0 %v3153_v21 }
0x1225   :  { %v3116_v23 = vpop.xlane.xlu1 %3115 }
0x1226   :  { %v3132_v37 = vsub.f32 %v3100_v51, %v3116_v23  ;;  %v3113_v42 = vpop.xlane.xlu0 %3112 }
0x1227   :  { %v3131_v0 = vsub.f32 %v3099_v29, %v3113_v42 }
0x1228   :  { %v3143_v15 = vmul.f32 1.442695, %v3132_v37 }
0x1229   :  { %v3141_v46 = vmul.f32 1.442695, %v3131_v0  ;;  %v3122_v35 = vpop.xlane.xlu1 %3121 }
0x122a   :  { %5032 = vpow2.f32 %v3143_v15  ;;  %v3134_v7 = vsub.f32 %v3102_v59, %v3122_v35  ;;  %v3119_v40 = vpop.xlane.xlu0 %3118 }
0x122b   :  { %5034 = vpow2.f32 %v3141_v46  ;;  %v3133_v47 = vsub.f32 %v3101_v63, %v3119_v40 }
0x122c   :  { %v3147_v49 = vmul.f32 1.442695, %v3134_v7 }
0x122d   :  { %v3145_v54 = vmul.f32 1.442695, %v3133_v47  ;;  %v3128_v31 = vpop.xlane.xlu1 %3127 }
0x122e   :  { %5036 = vpow2.f32 %v3147_v49  ;;  %v3136_v50 = vsub.f32 %v3104_v62, %v3128_v31  ;;  %v3125_v56 = vpop.xlane.xlu0 %3124  ;;  %v3831_v49 = vld [vmem:[#allocation2 + $0x40] sm:$0xff] }
0x122f   :  { %5038 = vpow2.f32 %v3145_v54  ;;  %v3135_v33 = vsub.f32 %v3103_v19, %v3125_v56  ;;  %v3832_v54 = vld [vmem:[#allocation2 + $0x98] sm:$0xff]  ;;  %v3834_v56 = vld [vmem:[#allocation2 + $0x148] sm:$0xff] }
0x1230   :  { %v3151_v36 = vmul.f32 1.442695, %v3136_v50  ;;  %v4914_v31 = vpack.c.bf16 %v3832_v54, %v3831_v49  ;;  %v3833_v50 = vld [vmem:[#allocation2 + $0xf0] sm:$0xff]  ;;  %v3977_v49 = vld [vmem:[#allocation2 + $0xf8] sm:$0xff] }
0x1231   :  { %v3149_v34 = vmul.f32 1.442695, %v3135_v33  ;;  %v3270_v38 = vpop.permute.xlu1 %3269  ;;  %v4918_v33 = vpack.c.bf16 %v3834_v56, %v3833_v50  ;;  %v3978_v54 = vld [vmem:[#allocation2 + $0x150] sm:$0xff] }
0x1232   :  { %5040 = vpow2.f32 %v3151_v36  ;;  %v3194_v39 = vpop.permute.xlu0 %3193  ;;  %4764 = vmatpush3.msra.mxu0 %v3270_v38 }
0x1233   :  { %5042 = vpow2.f32 %v3149_v34  ;;  %4759 = vmatpush3.msra.mxu1 %v3194_v39  ;;  %4773 = vmatprep.subr.mxu0 %v5132_v1 }
0x1234   :  { %v5033_v51 = vpop.eup %5032  ;;  %4768 = vmatprep.subr.mxu1 %v5132_v1 }
0x1235   :  { %v5035_v52 = vpop.eup %5034  ;;  %v3162_v41 = vsel %vm157_vm3, %v5033_v51, 0.0  ;;  %v3346_v61 = vpop.permute.xlu1 %3345 }
0x1236   :  { %3163 = vadd.xlane.f32.xlu1 %v3162_v41  ;;  %v3159_v29 = vsel %vm157_vm3, %v5035_v52, 0.0  ;;  %v3422_v63 = vpop.permute.xlu0 %3421 }
0x1237   :  { %3160 = vadd.xlane.f32.xlu0 %v3159_v29 }
0x1238   :  { %v5037_v53 = vpop.eup %5036 }
0x1239   :  { %v5039_v55 = vpop.eup %5038  ;;  %v3168_v43 = vsel %vm157_vm3, %v5037_v53, 0.0  ;;  %v3498_v2 = vpop.permute.xlu1 %3497 }
0x123a   :  { %3169 = vadd.xlane.f32.xlu1 %v3168_v43  ;;  %v3165_v58 = vsel %vm157_vm3, %v5039_v55, 0.0  ;;  %v3574_v3 = vpop.permute.xlu0 %3573 }
0x123b   :  { %3166 = vadd.xlane.f32.xlu0 %v3165_v58 }
0x123c   :  { %v5729_v28 = vpop.eup %5040 }
0x123d   :  { %v5731_v11 = vpop.eup %5042  ;;  %v3174_v59 = vsel %vm157_vm3, %v5729_v28, 0.0 }
0x123e   :  { %3175 = vadd.xlane.f32.xlu1 %v3174_v59  ;;  %v3171_v60 = vsel %vm157_vm3, %v5731_v11, 0.0 }
0x123f   :  { %3172 = vadd.xlane.f32.xlu0 %v3171_v60 }
0x124f   :  { %3649 = vrot.lane.b32.xlu1 %v5627_v26, %s5138_s18 }
0x1255   :  { %3725 = vrot.lane.b32.xlu0 %v5623_v25, %s5138_s18 }
0x126a   :  { %v3158_v4 = vpop.xlane.xlu1 %3157 }
0x126b   :  { %5044 = vrcp.f32 %v3158_v4  ;;  %v3155_v12 = vpop.xlane.xlu0 %3154 }
0x126c   :  { %5046 = vrcp.f32 %v3155_v12 }
0x1275   :  { %v5045_v8 = vpop.eup %5044 }
0x1276   :  { %v5047_v17 = vpop.eup %5046  ;;  %v3180_v62 = vmul.f32 %v5045_v8, %v5715_v22 }
0x1277   :  { %v3178_v18 = vmul.f32 %v5047_v17, %v5717_v20  ;;  %v281_v17 = vsub.s32 2, %v5248_v57 }
0x1278   :  { %4766 = vmatmul.mubr.msk.f32.vlgmr.msra.gmra.mrb[38].mxu0 %vm157_vm3, %v3180_v62  ;;  %v5787_v62 = vld [vmem:[%s5867_s5 + $0x1] sm:$0xf] }
0x1279   :  { %4774 = vmatpush3.msra.mxu0 %v3422_v63  ;;  %4761 = vmatmul.mubr.msk.f32.vlgmr.msra.gmra.mrb[30].mxu1 %vm157_vm3, %v3178_v18  ;;  %v282_v18 = vrot.slane %v5787_v62, %v281_v17  ;;  %v4091_v17 = vld [vmem:[#allocation4 + $0x68] sm:$0xff] }
0x127a   :  { %4769 = vmatpush3.msra.mxu1 %v3346_v61  ;;  %4775 = vmatprep.mubr.msk.f32.mxu0 %vm5134_vm6, %v5132_v1 }
0x127b   :  { %4783 = vmatprep.subr.mxu0 %v5132_v1  ;;  %4770 = vmatprep.mubr.msk.f32.mxu1 %vm5134_vm6, %v5132_v1 }
0x127c   :  { %4778 = vmatprep.subr.mxu1 %v5132_v1 }
0x12c3   :  { %v3164_v25 = vpop.xlane.xlu1 %3163 }
0x12c4   :  { %5048 = vrcp.f32 %v3164_v25  ;;  %v3161_v26 = vpop.xlane.xlu0 %3160  ;;  %v4421_v25 = vld [vmem:[%s5867_s5 + $0xa] ss:$0 sm:$0xff] }
0x12c5   :  { %5050 = vrcp.f32 %v3161_v26 }
0x12c7   :  { %v3170_v19 = vpop.xlane.xlu1 %3169 }
0x12c8   :  { %5052 = vrcp.f32 %v3170_v19  ;;  %v3167_v27 = vpop.xlane.xlu0 %3166  ;;  %v5794_v19 = vadd.f32 %v5267_v13, %v282_v18 }
0x12c9   :  { %5054 = vrcp.f32 %v3167_v27 }
0x12cb   :  { %v3176_v48 = vpop.xlane.xlu1 %3175 }
0x12cc   :  { %5056 = vrcp.f32 %v3176_v48  ;;  %v3173_v14 = vpop.xlane.xlu0 %3172 }
0x12cd   :  { %5058 = vrcp.f32 %v3173_v14  ;;  %v5797_v14 = vadd.f32 %v5258_v5, %v282_v18  ;;  %v4092_v18 = vld [vmem:[#allocation4 + $0x78] sm:$0xff] }
0x12ce   :  { %v5049_v6 = vpop.eup %5048 }
0x12cf   :  { %v5051_v30 = vpop.eup %5050  ;;  %v3184_v10 = vmul.f32 %v5049_v6, %v5033_v51  ;;  %v3650_v42 = vpop.permute.xlu1 %3649 }
0x12d0   :  { %v3182_v32 = vmul.f32 %v5051_v30, %v5035_v52  ;;  %v3726_v23 = vpop.permute.xlu0 %3725 }
0x12d1   :  { %4776 = vmatmul.mubr.msk.f32.vlgmr.msra.gmra.mrb[40].mxu0 %vm157_vm3, %v3184_v10 }
0x12d2   :  { %v5053_v22 = vpop.eup %5052  ;;  %4784 = vmatpush3.msra.mxu0 %v3574_v3  ;;  %4771 = vmatmul.mubr.msk.f32.vlgmr.msra.gmra.mrb[32].mxu1 %vm157_vm3, %v3182_v32 }
0x12d3   :  { %v5055_v20 = vpop.eup %5054  ;;  %v3188_v24 = vmul.f32 %v5053_v22, %v5037_v53  ;;  %4779 = vmatpush3.msra.mxu1 %v3498_v2  ;;  %4785 = vmatprep.mubr.msk.f32.mxu0 %vm5134_vm6, %v5132_v1 }
0x12d4   :  { %v3186_v21 = vmul.f32 %v5055_v20, %v5039_v55  ;;  %4793 = vmatprep.subr.mxu0 %v5132_v1  ;;  %4780 = vmatprep.mubr.msk.f32.mxu1 %vm5134_vm6, %v5132_v1 }
0x12d5   :  { %4786 = vmatmul.mubr.msk.f32.vlgmr.msra.gmra.mrb[42].mxu0 %vm157_vm3, %v3188_v24  ;;  %4788 = vmatprep.subr.mxu1 %v5132_v1 }
0x12d6   :  { %v5057_v37 = vpop.eup %5056  ;;  %4794 = vmatpush3.msra.mxu0 %v3726_v23  ;;  %4781 = vmatmul.mubr.msk.f32.vlgmr.msra.gmra.mrb[34].mxu1 %vm157_vm3, %v3186_v21 }
0x12d7   :  { %v5059_v0 = vpop.eup %5058  ;;  %v3192_v15 = vmul.f32 %v5057_v37, %v5729_v28  ;;  %4789 = vmatpush3.msra.mxu1 %v3650_v42  ;;  %4795 = vmatprep.mubr.msk.f32.mxu0 %vm5134_vm6, %v5132_v1 }
0x12d8   :  { %v3190_v46 = vmul.f32 %v5059_v0, %v5731_v11  ;;  %4790 = vmatprep.mubr.msk.f32.mxu1 %vm5134_vm6, %v5132_v1  ;;  %4915 = vmatprep.subr.bf16.mxu1 %v4914_v31 }
0x12d9   :  { %4796 = vmatmul.mubr.msk.f32.vlgmr.msra.gmra.mrb[44].mxu0 %vm157_vm3, %v3192_v15 }
0x12da   :  { %4791 = vmatmul.mubr.msk.f32.vlgmr.msra.gmra.mrb[36].mxu1 %vm157_vm3, %v3190_v46  ;;  %v3954_v46 = vadd.f32 1.0, %v5794_v19 }
0x12db   :  { %4917 = vmatpush3.bf16.msra.mxu1 %v4914_v31  ;;  %v4926_v31 = vpack.c.bf16 %v3978_v54, %v3977_v49  ;;  %v4427_v49 = vld [vmem:[%s5867_s5 + $0xc] ss:$0 sm:$0xff] }
0x12dc   :  { %4919 = vmatprep.subr.bf16.mxu1 %v4918_v33 }
0x12df   :  { %4921 = vmatpush3.bf16.msra.mxu1 %v4918_v33 }
0x134b   :  { %v3341_v35 = vpop.f32.mrb[38].mxu0 }
0x134c   :  { %v3265_v7 = vpop.f32.mrb[30].mxu1  ;;  %v4767_v40 = vpop.f32.mrb[39].mxu0 }
0x134d   :  { %v4762_v47 = vpop.f32.mrb[31].mxu1  ;;  %v3976_v40 = vld [vmem:[#allocation2 + $0xa0] sm:$0xff] }
0x13a4   :  { %v3493_v36 = vpop.f32.mrb[40].mxu0 }
0x13a5   :  { %v3417_v1 = vpop.f32.mrb[32].mxu1  ;;  %3805 = vrot.lane.b32.xlu0 %v3493_v36, %s5139_s19  ;;  %v4777_v34 = vpop.f32.mrb[41].mxu0 }
0x13a6   :  { %3803 = vrot.lane.b32.xlu1 %v3417_v1, %s5139_s19  ;;  %v4772_v38 = vpop.f32.mrb[33].mxu1 }
0x13a8   :  { %v3645_v39 = vpop.f32.mrb[42].mxu0 }
0x13a9   :  { %v3569_v51 = vpop.f32.mrb[34].mxu1  ;;  %3813 = vrot.lane.b32.xlu0 %v3645_v39, %s5130_s21  ;;  %v4787_v52 = vpop.f32.mrb[43].mxu0 }
0x13aa   :  { %3811 = vrot.lane.b32.xlu1 %v3569_v51, %s5130_s21  ;;  %v4782_v41 = vpop.f32.mrb[35].mxu1 }
0x13ac   :  { %v3797_v29 = vpop.f32.mrb[44].mxu0 }
0x13ad   :  { %3821 = vrot.lane.b32.xlu0 %v3797_v29, %s5140_s20  ;;  %v3721_v53 = vpop.f32.mrb[36].mxu1  ;;  %v4797_v55 = vpop.f32.mrb[45].mxu0 }
0x13ae   :  { %3819 = vrot.lane.b32.xlu1 %v3721_v53, %s5140_s20  ;;  %v4792_v43 = vpop.f32.mrb[37].mxu1 }
0x1417   :  { %v3806_v58 = vpop.permute.xlu0 %3805 }
0x1418   :  { %v3804_v28 = vpop.permute.xlu1 %3803  ;;  %v3826_v63 = vsel %vm157_vm3, %v3341_v35, %v3806_v58  ;;  %v3953_v35 = vadd.f32 1.0, %v5797_v14 }
0x1419   :  { %v3825_v60 = vsel %vm157_vm3, %v3265_v7, %v3804_v28  ;;  %v3975_v7 = vld [vmem:[#allocation2 + $0x48] sm:$0xff] }
0x141a   :  { %v4922_v47 = vpack.c.bf16 %v3976_v40, %v3975_v7 }
0x141b   :  { %v3814_v11 = vpop.permute.xlu0 %3813 }
0x141c   :  { %v3812_v59 = vpop.permute.xlu1 %3811  ;;  %v3828_v4 = vsel %vm1944_vm8, %v3826_v63, %v3814_v11  ;;  %4923 = vmatprep.subr.bf16.mxu0 %v4922_v47  ;;  %v4087_v63 = vld [vmem:[#allocation4 + $0x28] sm:$0xff] }
0x141d   :  { %v3827_v2 = vsel %vm1944_vm8, %v3825_v60, %v3812_v59  ;;  %4925 = vmatpush3.bf16.msra.mxu0 %v4922_v47  ;;  %v4085_v59 = vld [vmem:[#allocation4 + $0x8] sm:$0xff]  ;;  %v4086_v60 = vld [vmem:[#allocation4 + $0x18] sm:$0xff] }
0x141e   :  { %4927 = vmatprep.subr.bf16.mxu0 %v4926_v31 }
0x141f   :  { %v3822_v61 = vpop.permute.xlu0 %3821 }
0x1420   :  { %v3820_v3 = vpop.permute.xlu1 %3819  ;;  %v3830_v8 = vsel %vm1947_vm9, %v3828_v4, %v3822_v61  ;;  %v4930_v61 = vpack.c.bf16 %v4086_v60, %v4085_v59  ;;  %v4089_v4 = vld [vmem:[#allocation4 + $0x48] sm:$0xff] }
0x1421   :  { %v3829_v12 = vsel %vm1947_vm9, %v3827_v2, %v3820_v3  ;;  %4929 = vmatpush3.bf16.msra.mxu0 %v4926_v31  ;;  %v4088_v2 = vld [vmem:[#allocation4 + $0x38] sm:$0xff] }
0x1422   :  { %4806 = vmatprep.mubr.msk.f32.mxu1 %vm291_vm2, %v3829_v12  ;;  %v4934_v3 = vpack.c.bf16 %v4088_v2, %v4087_v63  ;;  %v4090_v12 = vld [vmem:[#allocation4 + $0x58] sm:$0xff]  ;;  %4931 = vmatprep.subr.bf16.mxu1 %v4930_v61 }
0x1423   :  { %4807 = vmatmul.mubr.msk.f32.vlgmr.msra.gmra.mrb[38].mxu1 %vm291_vm2, %v3830_v8  ;;  %v4938_v8 = vpack.c.bf16 %v4090_v12, %v4089_v4  ;;  %v4241_v4 = vld [vmem:[#allocation2 + $0x50] sm:$0xff]  ;;  %v4242_v12 = vld [vmem:[#allocation2 + $0xa8] sm:$0xff] }
0x1424   :  { %4933 = vmatpush3.bf16.msra.mxu1 %v4930_v61 }
0x1425   :  { %4935 = vmatprep.subr.bf16.mxu1 %v4934_v3 }
0x1428   :  { %4937 = vmatpush3.bf16.msra.mxu1 %v4934_v3 }
0x1429   :  { %4939 = vmatprep.subr.bf16.mxu1 %v4938_v8 }
0x142c   :  { %4941 = vmatpush3.bf16.msra.mxu1 %v4938_v8  ;;  %v4946_v8 = vpack.c.bf16 %v4242_v12, %v4241_v4 }
0x142e   :  { %4947 = vmatprep.subr.bf16.mxu0 %v4946_v8 }
0x14f6   :  { %v4808_v26 = vpop.f32.mrb[38].mxu1 }
0x14f7   :  { %v3920_v27 = vadd.f32 %v4808_v26, %v4421_v25  ;;  %v3914_v48 = vpop.f32.mrb[39].mxu1  ;;  %v4424_v26 = vld [vmem:[%s5867_s5 + $0xb] ss:$0 sm:$0xff] }
0x14f8   :  { %v3915_v6 = vadd.f32 %v4421_v25, %v3914_v48  ;;  %v4942_v25 = vpack.c.bf16 %v4092_v18, %v4091_v17  ;;  %v4243_v17 = vld [vmem:[#allocation2 + $0x100] sm:$0xff]  ;;  %v4244_v18 = vld [vmem:[#allocation2 + $0x158] sm:$0xff] }
0x14f9   :  { %v3924_v30 = vmul.f32 %v3920_v27, %v5794_v19 }
0x14fa   :  { %v3923_v10 = vmul.f32 %v3915_v6, %v5797_v14  ;;  %4943 = vmatprep.subr.bf16.mxu1 %v4942_v25 }
0x14fb   :  { %v5802_v32 = vadd.f32 %v3924_v30, %v5558_v44  ;;  %4945 = vmatpush3.bf16.msra.mxu1 %v4942_v25 }
0x14fc   :  { %v5805_v22 = vadd.f32 %v3923_v10, %v5561_v45 }
0x14fd   :  { %v3930_v13 = vsel %vm291_vm2, %v5802_v32, 0.0 }
0x14fe   :  { %3931 = vadd.xlane.f32.xlu0 %v3930_v13  ;;  %v3927_v20 = vsel %vm291_vm2, %v5805_v22, 0.0 }
0x14ff   :  { %3928 = vadd.xlane.f32.xlu1 %v3927_v20 }
0x158b   :  { %v3932_v5 = vpop.xlane.xlu0 %3931 }
0x158c   :  { %v3934_v24 = vmul.f32 0.03125, %v3932_v5  ;;  %v3929_v21 = vpop.xlane.xlu1 %3928 }
0x158d   :  { %v3933_v23 = vmul.f32 0.03125, %v3929_v21 }
0x158e   :  { %v3936_v37 = vsub.f32 %v5802_v32, %v3934_v24 }
0x158f   :  { %v3935_v44 = vsub.f32 %v5805_v22, %v3933_v23 }
0x1590   :  { %v3938_v42 = vmul.f32 %v3936_v37, %v3936_v37 }
0x1591   :  { %v3937_v0 = vmul.f32 %v3935_v44, %v3935_v44 }
0x1592   :  { %v3942_v45 = vsel %vm291_vm2, %v3938_v42, 0.0 }
0x1593   :  { %3943 = vadd.xlane.f32.xlu1 %v3942_v45  ;;  %v3939_v15 = vsel %vm291_vm2, %v3937_v0, 0.0 }
0x1594   :  { %3940 = vadd.xlane.f32.xlu0 %v3939_v15 }
0x15a4   :  { %3959 = vrot.lane.b32.xlu1 %v3954_v46, %s5138_s18 }
0x15a8   :  { %3967 = vrot.lane.b32.xlu1 %v5797_v14, %s5133_s2 }
0x15aa   :  { %3957 = vrot.lane.b32.xlu0 %v3953_v35, %s5138_s18 }
0x15ae   :  { %3969 = vrot.lane.b32.xlu0 %v5794_v19, %s5133_s2 }
0x1620   :  { %v3944_v50 = vpop.xlane.xlu1 %3943 }
0x1621   :  { %v3946_v56 = vmul.f32 0.03125, %v3944_v50  ;;  %v3941_v33 = vpop.xlane.xlu0 %3940 }
0x1622   :  { %v3945_v36 = vmul.f32 0.03125, %v3941_v33 }
0x1623   :  { %v3948_v1 = vadd.f32 1e-06, %v3946_v56 }
0x1624   :  { %v3947_v34 = vadd.f32 1e-06, %v3945_v36  ;;  %v3960_v38 = vpop.permute.xlu1 %3959 }
0x1625   :  { %5060 = vrsqrt.f32 %v3948_v1  ;;  %v3958_v51 = vpop.permute.xlu0 %3957 }
0x1626   :  { %5062 = vrsqrt.f32 %v3947_v34 }
0x1628   :  { %v3968_v43 = vpop.permute.xlu1 %3967 }
0x1629   :  { %v3970_v28 = vpop.permute.xlu0 %3969 }
0x162f   :  { %v5061_v39 = vpop.eup %5060 }
0x1630   :  { %v5063_v52 = vpop.eup %5062  ;;  %v3952_v41 = vmul.f32 %v5061_v39, %v3936_v37 }
0x1631   :  { %v3951_v29 = vmul.f32 %v5063_v52, %v3935_v44 }
0x1632   :  { %v3964_v53 = vmul.f32 %v3960_v38, %v3952_v41 }
0x1633   :  { %v3963_v55 = vmul.f32 %v3958_v51, %v3951_v29 }
0x1634   :  { %v3974_v11 = vadd.f32 %v3970_v28, %v3964_v53 }
0x1635   :  { %v3973_v58 = vadd.f32 %v3968_v43, %v3963_v55 }
0x1637   :  { %4817 = vmatprep.mubr.msk.f32.mxu0 %vm291_vm2, %v3973_v58 }
0x1638   :  { %4818 = vmatmul.mubr.msk.f32.vlgmr.msra.gmra.mrb[46].mxu0 %vm291_vm2, %v3974_v11 }
0x1639   :  { %4949 = vmatpush3.bf16.msra.mxu0 %v4946_v8 }
0x170b   :  { %v4819_v27 = vpop.f32.mrb[46].mxu0 }
0x170c   :  { %v4064_v48 = vadd.f32 %v4819_v27, %v4424_v26  ;;  %v4058_v6 = vpop.f32.mrb[47].mxu0 }
0x170d   :  { %v4059_v30 = vadd.f32 %v4424_v26, %v4058_v6 }
0x170e   :  { %v4070_v10 = vmul.f32 0.044715, %v4064_v48  ;;  %v4068_v7 = vmul.f32 0.5, %v4064_v48 }
0x170f   :  { %v4069_v13 = vmul.f32 0.044715, %v4059_v30  ;;  %v4067_v46 = vmul.f32 0.5, %v4059_v30 }
0x1710   :  { %v4072_v20 = vmul.f32 %v4070_v10, %v4064_v48 }
0x1711   :  { %v4071_v5 = vmul.f32 %v4069_v13, %v4059_v30 }
0x1712   :  { %v4074_v24 = vmul.f32 %v4072_v20, %v4064_v48 }
0x1713   :  { %v4073_v21 = vmul.f32 %v4071_v5, %v4059_v30 }
0x1714   :  { %v4076_v23 = vadd.f32 %v4074_v24, %v4064_v48 }
0x1715   :  { %v4075_v37 = vadd.f32 %v4073_v21, %v4059_v30 }
0x1716   :  { %v4078_v44 = vmul.f32 0.7978846, %v4076_v23 }
0x1717   :  { %v4077_v42 = vmul.f32 0.7978846, %v4075_v37  ;;  %v4430_v37 = vld [vmem:[%s5867_s5 + $0xd] ss:$0 sm:$0xff] }
0x1718   :  { %5064 = vtanh.f32 %v4078_v44 }
0x1719   :  { %5066 = vtanh.f32 %v4077_v42 }
0x1722   :  { %v5065_v0 = vpop.eup %5064 }
0x1723   :  { %v5067_v45 = vpop.eup %5066  ;;  %v4082_v15 = vadd.f32 1.0, %v5065_v0 }
0x1724   :  { %v4081_v35 = vadd.f32 1.0, %v5067_v45 }
0x1725   :  { %v4084_v47 = vmul.f32 %v4082_v15, %v4068_v7 }
0x1726   :  { %v4083_v40 = vmul.f32 %v4081_v35, %v4067_v46 }
0x1728   :  { %4836 = vmatprep.mubr.msk.f32.mxu1 %vm2227_vm10, %v4083_v40 }
0x1729   :  { %4837 = vmatmul.mubr.msk.f32.vlgmr.msra.gmra.mrb[40].mxu1 %vm2227_vm10, %v4084_v47 }
0x17fc   :  { %v4838_v54 = vpop.f32.mrb[40].mxu1 }
0x17fd   :  { %v4178_v31 = vadd.f32 %v4838_v54, %v4427_v49  ;;  %v4172_v50 = vpop.f32.mrb[41].mxu1 }
0x17fe   :  { %v4173_v56 = vadd.f32 %v4427_v49, %v4172_v50 }
0x17ff   :  { %4185 = vrot.lane.b32.xlu0 %v4178_v31, %s5133_s2 }
0x1800   :  { %4183 = vrot.lane.b32.xlu1 %v4173_v56, %s5133_s2 }
0x1871   :  { %v4186_v33 = vpop.permute.xlu0 %4185 }
0x1872   :  { %v4190_v36 = vmul.f32 %v4186_v33, %v5794_v19  ;;  %v4184_v1 = vpop.permute.xlu1 %4183 }
0x1873   :  { %v4189_v34 = vmul.f32 %v4184_v1, %v5797_v14 }
0x1874   :  { %4195 = vrot.lane.b32.xlu0 %v4190_v36, %s5141_s23 }
0x1875   :  { %4193 = vrot.lane.b32.xlu1 %v4189_v34, %s5141_s23 }
0x18e6   :  { %v4196_v38 = vpop.permute.xlu0 %4195 }
0x18e7   :  { %v4200_v39 = vadd.f32 %v4196_v38, %v5802_v32  ;;  %v4194_v51 = vpop.permute.xlu1 %4193 }
0x18e8   :  { %v4199_v52 = vadd.f32 %v4194_v51, %v5805_v22  ;;  %v285_v22 = vsub.s32 3, %v5248_v57  ;;  %v4950_v57 = vpack.c.bf16 %v4244_v18, %v4243_v17 }
0x18e9   :  { %v4204_v41 = vsel %vm291_vm2, %v4200_v39, 0.0 }
0x18ea   :  { %4205 = vadd.xlane.f32.xlu0 %v4204_v41  ;;  %v4201_v29 = vsel %vm291_vm2, %v4199_v52, 0.0  ;;  %v286_v60 = vrot.slane %v5787_v62, %v285_v22  ;;  %4951 = vmatprep.subr.bf16.mxu0 %v4950_v57 }
0x18eb   :  { %4202 = vadd.xlane.f32.xlu1 %v4201_v29  ;;  %4953 = vmatpush3.bf16.msra.mxu0 %v4950_v57 }
0x18ec   :  { %v450_v61 = vadd.f32 %v5273_v16, %v286_v60  ;;  %v444_v2 = vadd.f32 %v5264_v9, %v286_v60 }
0x18ee   :  { %v4228_v63 = vadd.f32 1.0, %v450_v61  ;;  %v4227_v3 = vadd.f32 1.0, %v444_v2 }
0x1977   :  { %v4206_v19 = vpop.xlane.xlu0 %4205 }
0x1978   :  { %v4208_v53 = vmul.f32 0.03125, %v4206_v19  ;;  %v4203_v55 = vpop.xlane.xlu1 %4202 }
0x1979   :  { %v4207_v14 = vmul.f32 0.03125, %v4203_v55 }
0x197a   :  { %v4210_v43 = vsub.f32 %v4200_v39, %v4208_v53 }
0x197b   :  { %v4209_v58 = vsub.f32 %v4199_v52, %v4207_v14 }
0x197c   :  { %v4212_v28 = vmul.f32 %v4210_v43, %v4210_v43 }
0x197d   :  { %v4211_v11 = vmul.f32 %v4209_v58, %v4209_v58 }
0x197e   :  { %v4216_v59 = vsel %vm291_vm2, %v4212_v28, 0.0 }
0x197f   :  { %4217 = vadd.xlane.f32.xlu1 %v4216_v59  ;;  %v4213_v32 = vsel %vm291_vm2, %v4211_v11, 0.0 }
0x1980   :  { %4214 = vadd.xlane.f32.xlu0 %v4213_v32 }
0x1990   :  { %4233 = vrot.lane.b32.xlu1 %v4228_v63, %s5133_s2 }
0x1996   :  { %4231 = vrot.lane.b32.xlu0 %v4227_v3, %s5133_s2 }
0x1a0c   :  { %v4218_v62 = vpop.xlane.xlu1 %4217 }
0x1a0d   :  { %v4220_v16 = vmul.f32 0.03125, %v4218_v62  ;;  %v4215_v25 = vpop.xlane.xlu0 %4214 }
0x1a0e   :  { %v4219_v26 = vmul.f32 0.03125, %v4215_v25 }
0x1a0f   :  { %v4222_v9 = vadd.f32 1e-06, %v4220_v16 }
0x1a10   :  { %v4221_v27 = vadd.f32 1e-06, %v4219_v26  ;;  %v4234_v10 = vpop.permute.xlu1 %4233 }
0x1a11   :  { %5068 = vrsqrt.f32 %v4222_v9  ;;  %v4232_v5 = vpop.permute.xlu0 %4231 }
0x1a12   :  { %5070 = vrsqrt.f32 %v4221_v27 }
0x1a1b   :  { %v5069_v48 = vpop.eup %5068 }
0x1a1c   :  { %v5071_v6 = vpop.eup %5070  ;;  %v4226_v30 = vmul.f32 %v5069_v48, %v4210_v43 }
0x1a1d   :  { %v4225_v13 = vmul.f32 %v5071_v6, %v4209_v58 }
0x1a1e   :  { %v4238_v20 = vmul.f32 %v4234_v10, %v4226_v30 }
0x1a1f   :  { %v4237_v24 = vmul.f32 %v4232_v5, %v4225_v13 }
0x1a20   :  { %v4240_v23 = vadd.f32 %v4238_v20, %v450_v61 }
0x1a21   :  { %v4239_v21 = vadd.f32 %v4237_v24, %v444_v2 }
0x1a23   :  { %4847 = vmatprep.mubr.msk.f32.mxu0 %vm291_vm2, %v4239_v21 }
0x1a24   :  { %4848 = vmatmul.mubr.msk.f32.vlgmr.msra.gmra.mrb[48].mxu0 %vm291_vm2, %v4240_v23 }
0x1af7   :  { %v4849_v44 = vpop.f32.mrb[48].mxu0 }
0x1af8   :  { %v4330_v42 = vadd.f32 %v4849_v44, %v4430_v37  ;;  %v4324_v0 = vpop.f32.mrb[49].mxu0 }
0x1af9   :  { %v4325_v45 = vadd.f32 %v4430_v37, %v4324_v0 }
0x1afa   :  { %5072 = vtanh.f32 %v4330_v42 }
0x1afb   :  { %5074 = vtanh.f32 %v4325_v45 }
0x1b04   :  { %v5073_v15 = vpop.eup %5072 }
0x1b05   :  { %v5075_v46 = vpop.eup %5074  ;;  %4337 = vst.msk [vmem:[%s5868_s6 + $0x8] sm:$0xff] %vm4335_vm11, %v5073_v15 }
0x1b06   :  { %4336 = vst.msk [vmem:[%s5868_s6] sm:$0xff] %vm4335_vm11, %v5075_v46 }
0x1b07   :  { %4342 = vsyncpa [#allocation3], 1 }
0x1b08   :  { %4343 = vsyncpa [#allocation5], 1 }

</bundles_post_ra>
